<compile_context>
chip_gen: v7x
topology: tpu7x:2x2x1
jax: 0.10.0
libtpu: 0.0.40
codegen_flags: <defaults>
</compile_context>

<pallas_src>
import functools

import jax
import jax.numpy as jnp
from jax.experimental import pallas as pl
from jax.experimental.pallas import tpu as pltpu


def _gru_fc_kernel(x_ref, w_ih_ref, b_ih_ref, w_hh_ref, b_hh_ref,
                   w_fc_ref, b_fc_ref, o_ref, h_ref, hs_ref,
                   *, hidden, t_tile):
    """Fused GRU + Linear + Sigmoid for one (batch tile, seq chunk).

    x_ref   : (b_tile, t_tile, I)
    w_ih_ref: (I, 3H)   b_ih_ref: (1, 3H)   gate order (r, z, n) like nn.GRU
    w_hh_ref: (H, 3H)   b_hh_ref: (1, 3H)
    w_fc_ref: (H, O)    b_fc_ref: (1, O)
    o_ref   : (b_tile, t_tile, O)
    h_ref   : (b_tile, H)          carried hidden state (VMEM scratch)
    hs_ref  : (b_tile, t_tile, H)  per-chunk hidden sequence (VMEM scratch)
    """
    b_tile = x_ref.shape[0]
    in_dim = x_ref.shape[2]
    h = hidden
    mm_dtype = w_ih_ref.dtype

    # New batch tile -> reset the carried hidden state (PyTorch default h0 = 0).
    @pl.when(pl.program_id(1) == 0)
    def _():
        h_ref[...] = jnp.zeros_like(h_ref)

    # ---- Input projection for the whole chunk: ONE MXU matmul (contraction = I) ----
    x2d = x_ref[...].reshape(b_tile * t_tile, in_dim).astype(mm_dtype)
    gx = jnp.dot(x2d, w_ih_ref[...], preferred_element_type=jnp.float32)
    gx = (gx + b_ih_ref[...].astype(jnp.float32)).reshape(b_tile, t_tile, 3 * h)

    # Hoist the per-gate lane split out of the serial time loop, and fold the r/z
    # recurrent biases here (they commute with the gh add inside the sigmoid).
    b_hh = b_hh_ref[...].astype(jnp.float32)                 # (1, 3H)
    gx_r = gx[:, :, :h] + b_hh[:, :h]                        # (b_tile, t_tile, H)
    gx_z = gx[:, :, h:2 * h] + b_hh[:, h:2 * h]
    gx_n = gx[:, :, 2 * h:]
    b_hh_n = b_hh[:, 2 * h:]                                 # must stay inside r * (...)

    # ---- Sequential GRU recurrence over the chunk (statically unrolled) ----
    w_hh = w_hh_ref[...]
    h_t = h_ref[...]
    for t in range(t_tile):
        gh = jnp.dot(h_t.astype(mm_dtype), w_hh,
                     preferred_element_type=jnp.float32)     # (b_tile, 3H)
        r = jax.nn.sigmoid(gx_r[:, t, :] + gh[:, :h])
        z = jax.nn.sigmoid(gx_z[:, t, :] + gh[:, h:2 * h])
        n = jnp.tanh(gx_n[:, t, :] + r * (gh[:, 2 * h:] + b_hh_n))
        h_t = (1.0 - z) * n + z * h_t
        hs_ref[:, t, :] = h_t
    h_ref[...] = h_t  # carry hidden state into the next seq chunk

    # ---- Output head for the whole chunk: ONE MXU matmul + sigmoid ----
    hs = hs_ref[...].reshape(b_tile * t_tile, h).astype(mm_dtype)
    y = jnp.dot(hs, w_fc_ref[...], preferred_element_type=jnp.float32)
    y = y + b_fc_ref[...].astype(jnp.float32)
    o_ref[...] = jax.nn.sigmoid(y).reshape(b_tile, t_tile, -1).astype(o_ref.dtype)


def gru_model_forward(x, params, *, t_tile=None, b_tile=None):
    """GRUModel.forward: sigmoid(Linear(GRU(x))).  x: (B, T, I) -> (B, T, O).

    For long sequences pick t_tile as a multiple of 8 (e.g. 32-128) so the seq axis is
    pipelined; the hidden state persists in VMEM scratch across seq chunks.
    """
    w_ih, b_ih, w_hh, b_hh, w_fc, b_fc = params
    batch, seq, in_dim = x.shape
    hidden = w_hh.shape[0]
    out_dim = w_fc.shape[1]
    if t_tile is None:
        t_tile = seq
    if b_tile is None:
        b_tile = batch
    assert seq % t_tile == 0 and batch % b_tile == 0
    grid = (batch // b_tile, seq // t_tile)

    kern = functools.partial(_gru_fc_kernel, hidden=hidden, t_tile=t_tile)
    return pl.pallas_call(
        kern,
        out_shape=jax.ShapeDtypeStruct((batch, seq, out_dim), x.dtype),
        grid_spec=pltpu.PrefetchScalarGridSpec(
            num_scalar_prefetch=0,
            grid=grid,
            in_specs=[
                pl.BlockSpec((b_tile, t_tile, in_dim), lambda b, i: (b, i, 0)),
                # Weights/biases: constant index maps -> DMA'd once, resident in VMEM.
                pl.BlockSpec((in_dim, 3 * hidden), lambda b, i: (0, 0)),
                pl.BlockSpec((1, 3 * hidden), lambda b, i: (0, 0)),
                pl.BlockSpec((hidden, 3 * hidden), lambda b, i: (0, 0)),
                pl.BlockSpec((1, 3 * hidden), lambda b, i: (0, 0)),
                pl.BlockSpec((hidden, out_dim), lambda b, i: (0, 0)),
                pl.BlockSpec((1, out_dim), lambda b, i: (0, 0)),
            ],
            out_specs=pl.BlockSpec((b_tile, t_tile, out_dim),
                                   lambda b, i: (b, i, 0)),
            scratch_shapes=[
                pltpu.VMEM((b_tile, hidden), jnp.float32),          # carried h state
                pltpu.VMEM((b_tile, t_tile, hidden), jnp.float32),  # chunk hidden seq
            ],
        ),
        compiler_params=pltpu.CompilerParams(
            # batch tiles are independent (megacore-shardable); seq chunks are a true
            # recurrence and must run in order.
            dimension_semantics=("parallel", "arbitrary"),
        ),
    )(x, w_ih, b_ih, w_hh, b_hh, w_fc, b_fc)


def init_gru_model_params(key, input_size, hidden_size, output_size):
    """Deterministic params in nn.GRU / nn.Linear layout, pre-transposed for the kernel.

    Gate order along the 3H axis is (reset, update, new), matching PyTorch."""
    ks = jax.random.split(key, 6)
    bound = 1.0 / float(jnp.sqrt(hidden_size))
    w_ih = jax.random.uniform(ks[0], (input_size, 3 * hidden_size), jnp.float32, -bound, bound)
    b_ih = jax.random.uniform(ks[1], (1, 3 * hidden_size), jnp.float32, -bound, bound)
    w_hh = jax.random.uniform(ks[2], (hidden_size, 3 * hidden_size), jnp.float32, -bound, bound)
    b_hh = jax.random.uniform(ks[3], (1, 3 * hidden_size), jnp.float32, -bound, bound)
    w_fc = jax.random.uniform(ks[4], (hidden_size, output_size), jnp.float32, -bound, bound)
    b_fc = jax.random.uniform(ks[5], (1, output_size), jnp.float32, -bound, bound)
    return (w_ih, b_ih, w_hh, b_hh, w_fc, b_fc)


def _reference_forward(x, params):
    """Pure-JAX reference (lax.scan GRU + Linear + Sigmoid) for correctness checking."""
    w_ih, b_ih, w_hh, b_hh, w_fc, b_fc = params
    hidden = w_hh.shape[0]

    def step(h, x_t):
        gx = x_t @ w_ih + b_ih[0]
        gh = h @ w_hh + b_hh[0]
        r = jax.nn.sigmoid(gx[:, :hidden] + gh[:, :hidden])
        z = jax.nn.sigmoid(gx[:, hidden:2 * hidden] + gh[:, hidden:2 * hidden])
        n = jnp.tanh(gx[:, 2 * hidden:] + r * gh[:, 2 * hidden:])
        h_new = (1.0 - z) * n + z * h
        return h_new, h_new

    h0 = jnp.zeros((x.shape[0], hidden), jnp.float32)
    _, hs = jax.lax.scan(step, h0, jnp.swapaxes(x, 0, 1))
    hs = jnp.swapaxes(hs, 0, 1)  # (B, T, H)
    return jax.nn.sigmoid(hs @ w_fc + b_fc[0])


if __name__ == "__main__":
    key = jax.random.PRNGKey(0)
    k_x, k_p = jax.random.split(key)

    # Small shapes consistent with the module: x is (batch, seq_len, input_size).
    # input/output sizes chosen lane-dense (multiples of 128) for the MXU matmuls / stores.
    batch, seq, input_size, hidden_size, output_size = 2, 8, 128, 16, 128
    x = jax.random.normal(k_x, (batch, seq, input_size), jnp.float32)
    params = init_gru_model_params(k_p, input_size, hidden_size, output_size)

    out = jax.block_until_ready(gru_model_forward(x, params))
    ref = jax.block_until_ready(_reference_forward(x, params))

    assert out.shape == (batch, seq, output_size), out.shape
    assert jnp.allclose(out, ref, atol=1e-4, rtol=1e-4), float(jnp.max(jnp.abs(out - ref)))

    # NOTE: the module's forward discards nn.GRU's final hidden state, so it is not returned.
    print("KERNEL_OK")
</pallas_src>

<mosaic_0001>
module attributes {stable_mosaic.version = 11 : i64} {
  func.func @_gru_fc_kernel(%arg0: i32, %arg1: i32, %arg2: memref<2x8x128xf32, #tpu.memory_space<vmem>>, %arg3: memref<128x48xf32, #tpu.memory_space<vmem>>, %arg4: memref<1x48xf32, #tpu.memory_space<vmem>>, %arg5: memref<16x48xf32, #tpu.memory_space<vmem>>, %arg6: memref<1x48xf32, #tpu.memory_space<vmem>>, %arg7: memref<16x128xf32, #tpu.memory_space<vmem>>, %arg8: memref<1x128xf32, #tpu.memory_space<vmem>>, %arg9: memref<2x8x128xf32, #tpu.memory_space<vmem>>, %arg10: memref<2x16xf32, #tpu.memory_space<vmem>>, %arg11: memref<2x8x16xf32, #tpu.memory_space<vmem>>) attributes {dimension_semantics = [#tpu.dimension_semantics<parallel>, #tpu.dimension_semantics<arbitrary>], iteration_bounds = array<i64: 1, 1>, scalar_prefetch = 0 : i64, scratch_operands = 2 : i64, tpu.core_type = #tpu.core_type<tc>, window_params = [{transform_indices = @transform_0, window_bounds = array<i64: 2, 8, 128>}, {pipeline_mode = #tpu.pipeline_mode<synchronous>, transform_indices = @transform_1, window_bounds = array<i64: 128, 48>}, {pipeline_mode = #tpu.pipeline_mode<synchronous>, transform_indices = @transform_2, window_bounds = array<i64: 1, 48>}, {pipeline_mode = #tpu.pipeline_mode<synchronous>, transform_indices = @transform_3, window_bounds = array<i64: 16, 48>}, {pipeline_mode = #tpu.pipeline_mode<synchronous>, transform_indices = @transform_4, window_bounds = array<i64: 1, 48>}, {pipeline_mode = #tpu.pipeline_mode<synchronous>, transform_indices = @transform_5, window_bounds = array<i64: 16, 128>}, {pipeline_mode = #tpu.pipeline_mode<synchronous>, transform_indices = @transform_6, window_bounds = array<i64: 1, 128>}, {transform_indices = @transform_7, window_bounds = array<i64: 2, 8, 128>}]} {
    %c0_i32 = arith.constant 0 : i32
    %0 = arith.cmpi eq, %arg1, %c0_i32 : i32
    %1 = arith.extui %0 : i1 to i32
    %c0_i32_0 = arith.constant 0 : i32
    %2 = arith.cmpi ne, %1, %c0_i32_0 : i32
    scf.if %2 {
      %cst_76 = arith.constant 0.000000e+00 : f32
      %321 = vector.broadcast %cst_76 : f32 to vector<2x16xf32>
      %c0_77 = arith.constant 0 : index
      %c0_78 = arith.constant 0 : index
      %322 = vector.load %arg10[%c0_77, %c0_78] : memref<2x16xf32, #tpu.memory_space<vmem>>, vector<2x16xf32>
      tpu.vector_store %arg10[%c0_77, %c0_78], %321 {strides = array<i32>} : memref<2x16xf32, #tpu.memory_space<vmem>>, vector<2x16xf32>,
    } else {
    }
    %c0 = arith.constant 0 : index
    %c0_1 = arith.constant 0 : index
    %c0_2 = arith.constant 0 : index
    %3 = vector.load %arg2[%c0, %c0_1, %c0_2] : memref<2x8x128xf32, #tpu.memory_space<vmem>>, vector<2x8x128xf32>
    %4 = vector.shape_cast %3 : vector<2x8x128xf32> to vector<16x128xf32>
    %c0_3 = arith.constant 0 : index
    %c0_4 = arith.constant 0 : index
    %5 = vector.load %arg3[%c0_3, %c0_4] : memref<128x48xf32, #tpu.memory_space<vmem>>, vector<128x48xf32>
    %cst = arith.constant dense<0.000000e+00> : vector<16x48xf32>
    %6 = tpu.matmul %4, %5, %cst {dimension_numbers = #tpu.dot_dimension_numbers<[1], [0], [0], [1], [0, 0, 1, 1], [], []>} : vector<16x128xf32>, vector<128x48xf32>, vector<16x48xf32> -> vector<16x48xf32>
    %c0_5 = arith.constant 0 : index
    %c0_6 = arith.constant 0 : index
    %7 = vector.load %arg4[%c0_5, %c0_6] : memref<1x48xf32, #tpu.memory_space<vmem>>, vector<1x48xf32>
    %8 = vector.broadcast %7 : vector<1x48xf32> to vector<16x48xf32>
    %9 = arith.addf %6, %8 : vector<16x48xf32>
    %10 = vector.shape_cast %9 : vector<16x48xf32> to vector<2x8x48xf32>
    %c0_7 = arith.constant 0 : index
    %c0_8 = arith.constant 0 : index
    %11 = vector.load %arg6[%c0_7, %c0_8] : memref<1x48xf32, #tpu.memory_space<vmem>>, vector<1x48xf32>
    %12 = vector.extract_strided_slice %10 {offsets = [0, 0, 0], sizes = [2, 8, 16], strides = [1, 1, 1]} : vector<2x8x48xf32> to vector<2x8x16xf32>
    %13 = vector.extract_strided_slice %11 {offsets = [0, 0], sizes = [1, 16], strides = [1, 1]} : vector<1x48xf32> to vector<1x16xf32>
    %14 = vector.shape_cast %13 : vector<1x16xf32> to vector<1x1x16xf32>
    %15 = vector.broadcast %14 : vector<1x1x16xf32> to vector<2x8x16xf32>
    %16 = arith.addf %12, %15 : vector<2x8x16xf32>
    %17 = vector.extract_strided_slice %10 {offsets = [0, 0, 16], sizes = [2, 8, 16], strides = [1, 1, 1]} : vector<2x8x48xf32> to vector<2x8x16xf32>
    %18 = vector.extract_strided_slice %11 {offsets = [0, 16], sizes = [1, 16], strides = [1, 1]} : vector<1x48xf32> to vector<1x16xf32>
    %19 = vector.shape_cast %18 : vector<1x16xf32> to vector<1x1x16xf32>
    %20 = vector.broadcast %19 : vector<1x1x16xf32> to vector<2x8x16xf32>
    %21 = arith.addf %17, %20 : vector<2x8x16xf32>
    %22 = vector.extract_strided_slice %10 {offsets = [0, 0, 32], sizes = [2, 8, 16], strides = [1, 1, 1]} : vector<2x8x48xf32> to vector<2x8x16xf32>
    %23 = vector.extract_strided_slice %11 {offsets = [0, 32], sizes = [1, 16], strides = [1, 1]} : vector<1x48xf32> to vector<1x16xf32>
    %c0_9 = arith.constant 0 : index
    %c0_10 = arith.constant 0 : index
    %24 = vector.load %arg5[%c0_9, %c0_10] : memref<16x48xf32, #tpu.memory_space<vmem>>, vector<16x48xf32>
    %c0_11 = arith.constant 0 : index
    %c0_12 = arith.constant 0 : index
    %25 = vector.load %arg10[%c0_11, %c0_12] : memref<2x16xf32, #tpu.memory_space<vmem>>, vector<2x16xf32>
    %cst_13 = arith.constant dense<0.000000e+00> : vector<2x48xf32>
    %26 = tpu.matmul %25, %24, %cst_13 {dimension_numbers = #tpu.dot_dimension_numbers<[1], [0], [0], [1], [0, 0, 1, 1], [], []>} : vector<2x16xf32>, vector<16x48xf32>, vector<2x48xf32> -> vector<2x48xf32>
    %27 = vector.extract_strided_slice %16 {offsets = [0, 0, 0], sizes = [2, 1, 16], strides = [1, 1, 1]} : vector<2x8x16xf32> to vector<2x1x16xf32>
    %28 = vector.shape_cast %27 : vector<2x1x16xf32> to vector<2x16xf32>
    %29 = vector.extract_strided_slice %26 {offsets = [0, 0], sizes = [2, 16], strides = [1, 1]} : vector<2x48xf32> to vector<2x16xf32>
    %30 = arith.addf %28, %29 : vector<2x16xf32>
    %31 = arith.negf %30 : vector<2x16xf32>
    %32 = math.exp %31 : vector<2x16xf32>
    %cst_14 = arith.constant 1.000000e+00 : f32
    %33 = vector.broadcast %cst_14 : f32 to vector<2x16xf32>
    %34 = arith.addf %33, %32 : vector<2x16xf32>
    %35 = arith.divf %33, %34 : vector<2x16xf32>
    %36 = vector.extract_strided_slice %21 {offsets = [0, 0, 0], sizes = [2, 1, 16], strides = [1, 1, 1]} : vector<2x8x16xf32> to vector<2x1x16xf32>
    %37 = vector.shape_cast %36 : vector<2x1x16xf32> to vector<2x16xf32>
    %38 = vector.extract_strided_slice %26 {offsets = [0, 16], sizes = [2, 16], strides = [1, 1]} : vector<2x48xf32> to vector<2x16xf32>
    %39 = arith.addf %37, %38 : vector<2x16xf32>
    %40 = arith.negf %39 : vector<2x16xf32>
    %41 = math.exp %40 : vector<2x16xf32>
    %cst_15 = arith.constant 1.000000e+00 : f32
    %42 = vector.broadcast %cst_15 : f32 to vector<2x16xf32>
    %43 = arith.addf %42, %41 : vector<2x16xf32>
    %44 = arith.divf %42, %43 : vector<2x16xf32>
    %45 = vector.extract_strided_slice %22 {offsets = [0, 0, 0], sizes = [2, 1, 16], strides = [1, 1, 1]} : vector<2x8x16xf32> to vector<2x1x16xf32>
    %46 = vector.shape_cast %45 : vector<2x1x16xf32> to vector<2x16xf32>
    %47 = vector.extract_strided_slice %26 {offsets = [0, 32], sizes = [2, 16], strides = [1, 1]} : vector<2x48xf32> to vector<2x16xf32>
    %48 = vector.broadcast %23 : vector<1x16xf32> to vector<2x16xf32>
    %49 = arith.addf %47, %48 : vector<2x16xf32>
    %50 = arith.mulf %35, %49 : vector<2x16xf32>
    %51 = arith.addf %46, %50 : vector<2x16xf32>
    %52 = math.tanh %51 : vector<2x16xf32>
    %cst_16 = arith.constant 1.000000e+00 : f32
    %53 = vector.broadcast %cst_16 : f32 to vector<2x16xf32>
    %54 = arith.subf %53, %44 : vector<2x16xf32>
    %55 = arith.mulf %54, %52 : vector<2x16xf32>
    %56 = arith.mulf %44, %25 : vector<2x16xf32>
    %57 = arith.addf %55, %56 : vector<2x16xf32>
    %c0_17 = arith.constant 0 : index
    %c0_18 = arith.constant 0 : index
    %c0_19 = arith.constant 0 : index
    %58 = vector.load %arg11[%c0_17, %c0_18, %c0_19] : memref<2x8x16xf32, #tpu.memory_space<vmem>>, vector<2x1x16xf32>
    %59 = vector.shape_cast %58 : vector<2x1x16xf32> to vector<2x16xf32>
    %60 = vector.shape_cast %57 : vector<2x16xf32> to vector<2x1x16xf32>
    tpu.vector_store %arg11[%c0_17, %c0_18, %c0_19], %60 {strides = array<i32>} : memref<2x8x16xf32, #tpu.memory_space<vmem>>, vector<2x1x16xf32>,
    %cst_20 = arith.constant dense<0.000000e+00> : vector<2x48xf32>
    %61 = tpu.matmul %57, %24, %cst_20 {dimension_numbers = #tpu.dot_dimension_numbers<[1], [0], [0], [1], [0, 0, 1, 1], [], []>} : vector<2x16xf32>, vector<16x48xf32>, vector<2x48xf32> -> vector<2x48xf32>
    %62 = vector.extract_strided_slice %16 {offsets = [0, 1, 0], sizes = [2, 1, 16], strides = [1, 1, 1]} : vector<2x8x16xf32> to vector<2x1x16xf32>
    %63 = vector.shape_cast %62 : vector<2x1x16xf32> to vector<2x16xf32>
    %64 = vector.extract_strided_slice %61 {offsets = [0, 0], sizes = [2, 16], strides = [1, 1]} : vector<2x48xf32> to vector<2x16xf32>
    %65 = arith.addf %63, %64 : vector<2x16xf32>
    %66 = arith.negf %65 : vector<2x16xf32>
    %67 = math.exp %66 : vector<2x16xf32>
    %cst_21 = arith.constant 1.000000e+00 : f32
    %68 = vector.broadcast %cst_21 : f32 to vector<2x16xf32>
    %69 = arith.addf %68, %67 : vector<2x16xf32>
    %70 = arith.divf %68, %69 : vector<2x16xf32>
    %71 = vector.extract_strided_slice %21 {offsets = [0, 1, 0], sizes = [2, 1, 16], strides = [1, 1, 1]} : vector<2x8x16xf32> to vector<2x1x16xf32>
    %72 = vector.shape_cast %71 : vector<2x1x16xf32> to vector<2x16xf32>
    %73 = vector.extract_strided_slice %61 {offsets = [0, 16], sizes = [2, 16], strides = [1, 1]} : vector<2x48xf32> to vector<2x16xf32>
    %74 = arith.addf %72, %73 : vector<2x16xf32>
    %75 = arith.negf %74 : vector<2x16xf32>
    %76 = math.exp %75 : vector<2x16xf32>
    %cst_22 = arith.constant 1.000000e+00 : f32
    %77 = vector.broadcast %cst_22 : f32 to vector<2x16xf32>
    %78 = arith.addf %77, %76 : vector<2x16xf32>
    %79 = arith.divf %77, %78 : vector<2x16xf32>
    %80 = vector.extract_strided_slice %22 {offsets = [0, 1, 0], sizes = [2, 1, 16], strides = [1, 1, 1]} : vector<2x8x16xf32> to vector<2x1x16xf32>
    %81 = vector.shape_cast %80 : vector<2x1x16xf32> to vector<2x16xf32>
    %82 = vector.extract_strided_slice %61 {offsets = [0, 32], sizes = [2, 16], strides = [1, 1]} : vector<2x48xf32> to vector<2x16xf32>
    %83 = vector.broadcast %23 : vector<1x16xf32> to vector<2x16xf32>
    %84 = arith.addf %82, %83 : vector<2x16xf32>
    %85 = arith.mulf %70, %84 : vector<2x16xf32>
    %86 = arith.addf %81, %85 : vector<2x16xf32>
    %87 = math.tanh %86 : vector<2x16xf32>
    %cst_23 = arith.constant 1.000000e+00 : f32
    %88 = vector.broadcast %cst_23 : f32 to vector<2x16xf32>
    %89 = arith.subf %88, %79 : vector<2x16xf32>
    %90 = arith.mulf %89, %87 : vector<2x16xf32>
    %91 = arith.mulf %79, %57 : vector<2x16xf32>
    %92 = arith.addf %90, %91 : vector<2x16xf32>
    %c0_24 = arith.constant 0 : index
    %c1 = arith.constant 1 : index
    %c0_25 = arith.constant 0 : index
    %93 = vector.load %arg11[%c0_24, %c1, %c0_25] : memref<2x8x16xf32, #tpu.memory_space<vmem>>, vector<2x1x16xf32>
    %94 = vector.shape_cast %93 : vector<2x1x16xf32> to vector<2x16xf32>
    %95 = vector.shape_cast %92 : vector<2x16xf32> to vector<2x1x16xf32>
    tpu.vector_store %arg11[%c0_24, %c1, %c0_25], %95 {strides = array<i32>} : memref<2x8x16xf32, #tpu.memory_space<vmem>>, vector<2x1x16xf32>,
    %cst_26 = arith.constant dense<0.000000e+00> : vector<2x48xf32>
    %96 = tpu.matmul %92, %24, %cst_26 {dimension_numbers = #tpu.dot_dimension_numbers<[1], [0], [0], [1], [0, 0, 1, 1], [], []>} : vector<2x16xf32>, vector<16x48xf32>, vector<2x48xf32> -> vector<2x48xf32>
    %97 = vector.extract_strided_slice %16 {offsets = [0, 2, 0], sizes = [2, 1, 16], strides = [1, 1, 1]} : vector<2x8x16xf32> to vector<2x1x16xf32>
    %98 = vector.shape_cast %97 : vector<2x1x16xf32> to vector<2x16xf32>
    %99 = vector.extract_strided_slice %96 {offsets = [0, 0], sizes = [2, 16], strides = [1, 1]} : vector<2x48xf32> to vector<2x16xf32>
    %100 = arith.addf %98, %99 : vector<2x16xf32>
    %101 = arith.negf %100 : vector<2x16xf32>
    %102 = math.exp %101 : vector<2x16xf32>
    %cst_27 = arith.constant 1.000000e+00 : f32
    %103 = vector.broadcast %cst_27 : f32 to vector<2x16xf32>
    %104 = arith.addf %103, %102 : vector<2x16xf32>
    %105 = arith.divf %103, %104 : vector<2x16xf32>
    %106 = vector.extract_strided_slice %21 {offsets = [0, 2, 0], sizes = [2, 1, 16], strides = [1, 1, 1]} : vector<2x8x16xf32> to vector<2x1x16xf32>
    %107 = vector.shape_cast %106 : vector<2x1x16xf32> to vector<2x16xf32>
    %108 = vector.extract_strided_slice %96 {offsets = [0, 16], sizes = [2, 16], strides = [1, 1]} : vector<2x48xf32> to vector<2x16xf32>
    %109 = arith.addf %107, %108 : vector<2x16xf32>
    %110 = arith.negf %109 : vector<2x16xf32>
    %111 = math.exp %110 : vector<2x16xf32>
    %cst_28 = arith.constant 1.000000e+00 : f32
    %112 = vector.broadcast %cst_28 : f32 to vector<2x16xf32>
    %113 = arith.addf %112, %111 : vector<2x16xf32>
    %114 = arith.divf %112, %113 : vector<2x16xf32>
    %115 = vector.extract_strided_slice %22 {offsets = [0, 2, 0], sizes = [2, 1, 16], strides = [1, 1, 1]} : vector<2x8x16xf32> to vector<2x1x16xf32>
    %116 = vector.shape_cast %115 : vector<2x1x16xf32> to vector<2x16xf32>
    %117 = vector.extract_strided_slice %96 {offsets = [0, 32], sizes = [2, 16], strides = [1, 1]} : vector<2x48xf32> to vector<2x16xf32>
    %118 = vector.broadcast %23 : vector<1x16xf32> to vector<2x16xf32>
    %119 = arith.addf %117, %118 : vector<2x16xf32>
    %120 = arith.mulf %105, %119 : vector<2x16xf32>
    %121 = arith.addf %116, %120 : vector<2x16xf32>
    %122 = math.tanh %121 : vector<2x16xf32>
    %cst_29 = arith.constant 1.000000e+00 : f32
    %123 = vector.broadcast %cst_29 : f32 to vector<2x16xf32>
    %124 = arith.subf %123, %114 : vector<2x16xf32>
    %125 = arith.mulf %124, %122 : vector<2x16xf32>
    %126 = arith.mulf %114, %92 : vector<2x16xf32>
    %127 = arith.addf %125, %126 : vector<2x16xf32>
    %c0_30 = arith.constant 0 : index
    %c2 = arith.constant 2 : index
    %c0_31 = arith.constant 0 : index
    %128 = vector.load %arg11[%c0_30, %c2, %c0_31] : memref<2x8x16xf32, #tpu.memory_space<vmem>>, vector<2x1x16xf32>
    %129 = vector.shape_cast %128 : vector<2x1x16xf32> to vector<2x16xf32>
    %130 = vector.shape_cast %127 : vector<2x16xf32> to vector<2x1x16xf32>
    tpu.vector_store %arg11[%c0_30, %c2, %c0_31], %130 {strides = array<i32>} : memref<2x8x16xf32, #tpu.memory_space<vmem>>, vector<2x1x16xf32>,
    %cst_32 = arith.constant dense<0.000000e+00> : vector<2x48xf32>
    %131 = tpu.matmul %127, %24, %cst_32 {dimension_numbers = #tpu.dot_dimension_numbers<[1], [0], [0], [1], [0, 0, 1, 1], [], []>} : vector<2x16xf32>, vector<16x48xf32>, vector<2x48xf32> -> vector<2x48xf32>
    %132 = vector.extract_strided_slice %16 {offsets = [0, 3, 0], sizes = [2, 1, 16], strides = [1, 1, 1]} : vector<2x8x16xf32> to vector<2x1x16xf32>
    %133 = vector.shape_cast %132 : vector<2x1x16xf32> to vector<2x16xf32>
    %134 = vector.extract_strided_slice %131 {offsets = [0, 0], sizes = [2, 16], strides = [1, 1]} : vector<2x48xf32> to vector<2x16xf32>
    %135 = arith.addf %133, %134 : vector<2x16xf32>
    %136 = arith.negf %135 : vector<2x16xf32>
    %137 = math.exp %136 : vector<2x16xf32>
    %cst_33 = arith.constant 1.000000e+00 : f32
    %138 = vector.broadcast %cst_33 : f32 to vector<2x16xf32>
    %139 = arith.addf %138, %137 : vector<2x16xf32>
    %140 = arith.divf %138, %139 : vector<2x16xf32>
    %141 = vector.extract_strided_slice %21 {offsets = [0, 3, 0], sizes = [2, 1, 16], strides = [1, 1, 1]} : vector<2x8x16xf32> to vector<2x1x16xf32>
    %142 = vector.shape_cast %141 : vector<2x1x16xf32> to vector<2x16xf32>
    %143 = vector.extract_strided_slice %131 {offsets = [0, 16], sizes = [2, 16], strides = [1, 1]} : vector<2x48xf32> to vector<2x16xf32>
    %144 = arith.addf %142, %143 : vector<2x16xf32>
    %145 = arith.negf %144 : vector<2x16xf32>
    %146 = math.exp %145 : vector<2x16xf32>
    %cst_34 = arith.constant 1.000000e+00 : f32
    %147 = vector.broadcast %cst_34 : f32 to vector<2x16xf32>
    %148 = arith.addf %147, %146 : vector<2x16xf32>
    %149 = arith.divf %147, %148 : vector<2x16xf32>
    %150 = vector.extract_strided_slice %22 {offsets = [0, 3, 0], sizes = [2, 1, 16], strides = [1, 1, 1]} : vector<2x8x16xf32> to vector<2x1x16xf32>
    %151 = vector.shape_cast %150 : vector<2x1x16xf32> to vector<2x16xf32>
    %152 = vector.extract_strided_slice %131 {offsets = [0, 32], sizes = [2, 16], strides = [1, 1]} : vector<2x48xf32> to vector<2x16xf32>
    %153 = vector.broadcast %23 : vector<1x16xf32> to vector<2x16xf32>
    %154 = arith.addf %152, %153 : vector<2x16xf32>
    %155 = arith.mulf %140, %154 : vector<2x16xf32>
    %156 = arith.addf %151, %155 : vector<2x16xf32>
    %157 = math.tanh %156 : vector<2x16xf32>
    %cst_35 = arith.constant 1.000000e+00 : f32
    %158 = vector.broadcast %cst_35 : f32 to vector<2x16xf32>
    %159 = arith.subf %158, %149 : vector<2x16xf32>
    %160 = arith.mulf %159, %157 : vector<2x16xf32>
    %161 = arith.mulf %149, %127 : vector<2x16xf32>
    %162 = arith.addf %160, %161 : vector<2x16xf32>
    %c0_36 = arith.constant 0 : index
    %c3 = arith.constant 3 : index
    %c0_37 = arith.constant 0 : index
    %163 = vector.load %arg11[%c0_36, %c3, %c0_37] : memref<2x8x16xf32, #tpu.memory_space<vmem>>, vector<2x1x16xf32>
    %164 = vector.shape_cast %163 : vector<2x1x16xf32> to vector<2x16xf32>
    %165 = vector.shape_cast %162 : vector<2x16xf32> to vector<2x1x16xf32>
    tpu.vector_store %arg11[%c0_36, %c3, %c0_37], %165 {strides = array<i32>} : memref<2x8x16xf32, #tpu.memory_space<vmem>>, vector<2x1x16xf32>,
    %cst_38 = arith.constant dense<0.000000e+00> : vector<2x48xf32>
    %166 = tpu.matmul %162, %24, %cst_38 {dimension_numbers = #tpu.dot_dimension_numbers<[1], [0], [0], [1], [0, 0, 1, 1], [], []>} : vector<2x16xf32>, vector<16x48xf32>, vector<2x48xf32> -> vector<2x48xf32>
    %167 = vector.extract_strided_slice %16 {offsets = [0, 4, 0], sizes = [2, 1, 16], strides = [1, 1, 1]} : vector<2x8x16xf32> to vector<2x1x16xf32>
    %168 = vector.shape_cast %167 : vector<2x1x16xf32> to vector<2x16xf32>
    %169 = vector.extract_strided_slice %166 {offsets = [0, 0], sizes = [2, 16], strides = [1, 1]} : vector<2x48xf32> to vector<2x16xf32>
    %170 = arith.addf %168, %169 : vector<2x16xf32>
    %171 = arith.negf %170 : vector<2x16xf32>
    %172 = math.exp %171 : vector<2x16xf32>
    %cst_39 = arith.constant 1.000000e+00 : f32
    %173 = vector.broadcast %cst_39 : f32 to vector<2x16xf32>
    %174 = arith.addf %173, %172 : vector<2x16xf32>
    %175 = arith.divf %173, %174 : vector<2x16xf32>
    %176 = vector.extract_strided_slice %21 {offsets = [0, 4, 0], sizes = [2, 1, 16], strides = [1, 1, 1]} : vector<2x8x16xf32> to vector<2x1x16xf32>
    %177 = vector.shape_cast %176 : vector<2x1x16xf32> to vector<2x16xf32>
    %178 = vector.extract_strided_slice %166 {offsets = [0, 16], sizes = [2, 16], strides = [1, 1]} : vector<2x48xf32> to vector<2x16xf32>
    %179 = arith.addf %177, %178 : vector<2x16xf32>
    %180 = arith.negf %179 : vector<2x16xf32>
    %181 = math.exp %180 : vector<2x16xf32>
    %cst_40 = arith.constant 1.000000e+00 : f32
    %182 = vector.broadcast %cst_40 : f32 to vector<2x16xf32>
    %183 = arith.addf %182, %181 : vector<2x16xf32>
    %184 = arith.divf %182, %183 : vector<2x16xf32>
    %185 = vector.extract_strided_slice %22 {offsets = [0, 4, 0], sizes = [2, 1, 16], strides = [1, 1, 1]} : vector<2x8x16xf32> to vector<2x1x16xf32>
    %186 = vector.shape_cast %185 : vector<2x1x16xf32> to vector<2x16xf32>
    %187 = vector.extract_strided_slice %166 {offsets = [0, 32], sizes = [2, 16], strides = [1, 1]} : vector<2x48xf32> to vector<2x16xf32>
    %188 = vector.broadcast %23 : vector<1x16xf32> to vector<2x16xf32>
    %189 = arith.addf %187, %188 : vector<2x16xf32>
    %190 = arith.mulf %175, %189 : vector<2x16xf32>
    %191 = arith.addf %186, %190 : vector<2x16xf32>
    %192 = math.tanh %191 : vector<2x16xf32>
    %cst_41 = arith.constant 1.000000e+00 : f32
    %193 = vector.broadcast %cst_41 : f32 to vector<2x16xf32>
    %194 = arith.subf %193, %184 : vector<2x16xf32>
    %195 = arith.mulf %194, %192 : vector<2x16xf32>
    %196 = arith.mulf %184, %162 : vector<2x16xf32>
    %197 = arith.addf %195, %196 : vector<2x16xf32>
    %c0_42 = arith.constant 0 : index
    %c4 = arith.constant 4 : index
    %c0_43 = arith.constant 0 : index
    %198 = vector.load %arg11[%c0_42, %c4, %c0_43] : memref<2x8x16xf32, #tpu.memory_space<vmem>>, vector<2x1x16xf32>
    %199 = vector.shape_cast %198 : vector<2x1x16xf32> to vector<2x16xf32>
    %200 = vector.shape_cast %197 : vector<2x16xf32> to vector<2x1x16xf32>
    tpu.vector_store %arg11[%c0_42, %c4, %c0_43], %200 {strides = array<i32>} : memref<2x8x16xf32, #tpu.memory_space<vmem>>, vector<2x1x16xf32>,
    %cst_44 = arith.constant dense<0.000000e+00> : vector<2x48xf32>
    %201 = tpu.matmul %197, %24, %cst_44 {dimension_numbers = #tpu.dot_dimension_numbers<[1], [0], [0], [1], [0, 0, 1, 1], [], []>} : vector<2x16xf32>, vector<16x48xf32>, vector<2x48xf32> -> vector<2x48xf32>
    %202 = vector.extract_strided_slice %16 {offsets = [0, 5, 0], sizes = [2, 1, 16], strides = [1, 1, 1]} : vector<2x8x16xf32> to vector<2x1x16xf32>
    %203 = vector.shape_cast %202 : vector<2x1x16xf32> to vector<2x16xf32>
    %204 = vector.extract_strided_slice %201 {offsets = [0, 0], sizes = [2, 16], strides = [1, 1]} : vector<2x48xf32> to vector<2x16xf32>
    %205 = arith.addf %203, %204 : vector<2x16xf32>
    %206 = arith.negf %205 : vector<2x16xf32>
    %207 = math.exp %206 : vector<2x16xf32>
    %cst_45 = arith.constant 1.000000e+00 : f32
    %208 = vector.broadcast %cst_45 : f32 to vector<2x16xf32>
    %209 = arith.addf %208, %207 : vector<2x16xf32>
    %210 = arith.divf %208, %209 : vector<2x16xf32>
    %211 = vector.extract_strided_slice %21 {offsets = [0, 5, 0], sizes = [2, 1, 16], strides = [1, 1, 1]} : vector<2x8x16xf32> to vector<2x1x16xf32>
    %212 = vector.shape_cast %211 : vector<2x1x16xf32> to vector<2x16xf32>
    %213 = vector.extract_strided_slice %201 {offsets = [0, 16], sizes = [2, 16], strides = [1, 1]} : vector<2x48xf32> to vector<2x16xf32>
    %214 = arith.addf %212, %213 : vector<2x16xf32>
    %215 = arith.negf %214 : vector<2x16xf32>
    %216 = math.exp %215 : vector<2x16xf32>
    %cst_46 = arith.constant 1.000000e+00 : f32
    %217 = vector.broadcast %cst_46 : f32 to vector<2x16xf32>
    %218 = arith.addf %217, %216 : vector<2x16xf32>
    %219 = arith.divf %217, %218 : vector<2x16xf32>
    %220 = vector.extract_strided_slice %22 {offsets = [0, 5, 0], sizes = [2, 1, 16], strides = [1, 1, 1]} : vector<2x8x16xf32> to vector<2x1x16xf32>
    %221 = vector.shape_cast %220 : vector<2x1x16xf32> to vector<2x16xf32>
    %222 = vector.extract_strided_slice %201 {offsets = [0, 32], sizes = [2, 16], strides = [1, 1]} : vector<2x48xf32> to vector<2x16xf32>
    %223 = vector.broadcast %23 : vector<1x16xf32> to vector<2x16xf32>
    %224 = arith.addf %222, %223 : vector<2x16xf32>
    %225 = arith.mulf %210, %224 : vector<2x16xf32>
    %226 = arith.addf %221, %225 : vector<2x16xf32>
    %227 = math.tanh %226 : vector<2x16xf32>
    %cst_47 = arith.constant 1.000000e+00 : f32
    %228 = vector.broadcast %cst_47 : f32 to vector<2x16xf32>
    %229 = arith.subf %228, %219 : vector<2x16xf32>
    %230 = arith.mulf %229, %227 : vector<2x16xf32>
    %231 = arith.mulf %219, %197 : vector<2x16xf32>
    %232 = arith.addf %230, %231 : vector<2x16xf32>
    %c0_48 = arith.constant 0 : index
    %c5 = arith.constant 5 : index
    %c0_49 = arith.constant 0 : index
    %233 = vector.load %arg11[%c0_48, %c5, %c0_49] : memref<2x8x16xf32, #tpu.memory_space<vmem>>, vector<2x1x16xf32>
    %234 = vector.shape_cast %233 : vector<2x1x16xf32> to vector<2x16xf32>
    %235 = vector.shape_cast %232 : vector<2x16xf32> to vector<2x1x16xf32>
    tpu.vector_store %arg11[%c0_48, %c5, %c0_49], %235 {strides = array<i32>} : memref<2x8x16xf32, #tpu.memory_space<vmem>>, vector<2x1x16xf32>,
    %cst_50 = arith.constant dense<0.000000e+00> : vector<2x48xf32>
    %236 = tpu.matmul %232, %24, %cst_50 {dimension_numbers = #tpu.dot_dimension_numbers<[1], [0], [0], [1], [0, 0, 1, 1], [], []>} : vector<2x16xf32>, vector<16x48xf32>, vector<2x48xf32> -> vector<2x48xf32>
    %237 = vector.extract_strided_slice %16 {offsets = [0, 6, 0], sizes = [2, 1, 16], strides = [1, 1, 1]} : vector<2x8x16xf32> to vector<2x1x16xf32>
    %238 = vector.shape_cast %237 : vector<2x1x16xf32> to vector<2x16xf32>
    %239 = vector.extract_strided_slice %236 {offsets = [0, 0], sizes = [2, 16], strides = [1, 1]} : vector<2x48xf32> to vector<2x16xf32>
    %240 = arith.addf %238, %239 : vector<2x16xf32>
    %241 = arith.negf %240 : vector<2x16xf32>
    %242 = math.exp %241 : vector<2x16xf32>
    %cst_51 = arith.constant 1.000000e+00 : f32
    %243 = vector.broadcast %cst_51 : f32 to vector<2x16xf32>
    %244 = arith.addf %243, %242 : vector<2x16xf32>
    %245 = arith.divf %243, %244 : vector<2x16xf32>
    %246 = vector.extract_strided_slice %21 {offsets = [0, 6, 0], sizes = [2, 1, 16], strides = [1, 1, 1]} : vector<2x8x16xf32> to vector<2x1x16xf32>
    %247 = vector.shape_cast %246 : vector<2x1x16xf32> to vector<2x16xf32>
    %248 = vector.extract_strided_slice %236 {offsets = [0, 16], sizes = [2, 16], strides = [1, 1]} : vector<2x48xf32> to vector<2x16xf32>
    %249 = arith.addf %247, %248 : vector<2x16xf32>
    %250 = arith.negf %249 : vector<2x16xf32>
    %251 = math.exp %250 : vector<2x16xf32>
    %cst_52 = arith.constant 1.000000e+00 : f32
    %252 = vector.broadcast %cst_52 : f32 to vector<2x16xf32>
    %253 = arith.addf %252, %251 : vector<2x16xf32>
    %254 = arith.divf %252, %253 : vector<2x16xf32>
    %255 = vector.extract_strided_slice %22 {offsets = [0, 6, 0], sizes = [2, 1, 16], strides = [1, 1, 1]} : vector<2x8x16xf32> to vector<2x1x16xf32>
    %256 = vector.shape_cast %255 : vector<2x1x16xf32> to vector<2x16xf32>
    %257 = vector.extract_strided_slice %236 {offsets = [0, 32], sizes = [2, 16], strides = [1, 1]} : vector<2x48xf32> to vector<2x16xf32>
    %258 = vector.broadcast %23 : vector<1x16xf32> to vector<2x16xf32>
    %259 = arith.addf %257, %258 : vector<2x16xf32>
    %260 = arith.mulf %245, %259 : vector<2x16xf32>
    %261 = arith.addf %256, %260 : vector<2x16xf32>
    %262 = math.tanh %261 : vector<2x16xf32>
    %cst_53 = arith.constant 1.000000e+00 : f32
    %263 = vector.broadcast %cst_53 : f32 to vector<2x16xf32>
    %264 = arith.subf %263, %254 : vector<2x16xf32>
    %265 = arith.mulf %264, %262 : vector<2x16xf32>
    %266 = arith.mulf %254, %232 : vector<2x16xf32>
    %267 = arith.addf %265, %266 : vector<2x16xf32>
    %c0_54 = arith.constant 0 : index
    %c6 = arith.constant 6 : index
    %c0_55 = arith.constant 0 : index
    %268 = vector.load %arg11[%c0_54, %c6, %c0_55] : memref<2x8x16xf32, #tpu.memory_space<vmem>>, vector<2x1x16xf32>
    %269 = vector.shape_cast %268 : vector<2x1x16xf32> to vector<2x16xf32>
    %270 = vector.shape_cast %267 : vector<2x16xf32> to vector<2x1x16xf32>
    tpu.vector_store %arg11[%c0_54, %c6, %c0_55], %270 {strides = array<i32>} : memref<2x8x16xf32, #tpu.memory_space<vmem>>, vector<2x1x16xf32>,
    %cst_56 = arith.constant dense<0.000000e+00> : vector<2x48xf32>
    %271 = tpu.matmul %267, %24, %cst_56 {dimension_numbers = #tpu.dot_dimension_numbers<[1], [0], [0], [1], [0, 0, 1, 1], [], []>} : vector<2x16xf32>, vector<16x48xf32>, vector<2x48xf32> -> vector<2x48xf32>
    %272 = vector.extract_strided_slice %16 {offsets = [0, 7, 0], sizes = [2, 1, 16], strides = [1, 1, 1]} : vector<2x8x16xf32> to vector<2x1x16xf32>
    %273 = vector.shape_cast %272 : vector<2x1x16xf32> to vector<2x16xf32>
    %274 = vector.extract_strided_slice %271 {offsets = [0, 0], sizes = [2, 16], strides = [1, 1]} : vector<2x48xf32> to vector<2x16xf32>
    %275 = arith.addf %273, %274 : vector<2x16xf32>
    %276 = arith.negf %275 : vector<2x16xf32>
    %277 = math.exp %276 : vector<2x16xf32>
    %cst_57 = arith.constant 1.000000e+00 : f32
    %278 = vector.broadcast %cst_57 : f32 to vector<2x16xf32>
    %279 = arith.addf %278, %277 : vector<2x16xf32>
    %280 = arith.divf %278, %279 : vector<2x16xf32>
    %281 = vector.extract_strided_slice %21 {offsets = [0, 7, 0], sizes = [2, 1, 16], strides = [1, 1, 1]} : vector<2x8x16xf32> to vector<2x1x16xf32>
    %282 = vector.shape_cast %281 : vector<2x1x16xf32> to vector<2x16xf32>
    %283 = vector.extract_strided_slice %271 {offsets = [0, 16], sizes = [2, 16], strides = [1, 1]} : vector<2x48xf32> to vector<2x16xf32>
    %284 = arith.addf %282, %283 : vector<2x16xf32>
    %285 = arith.negf %284 : vector<2x16xf32>
    %286 = math.exp %285 : vector<2x16xf32>
    %cst_58 = arith.constant 1.000000e+00 : f32
    %287 = vector.broadcast %cst_58 : f32 to vector<2x16xf32>
    %288 = arith.addf %287, %286 : vector<2x16xf32>
    %289 = arith.divf %287, %288 : vector<2x16xf32>
    %290 = vector.extract_strided_slice %22 {offsets = [0, 7, 0], sizes = [2, 1, 16], strides = [1, 1, 1]} : vector<2x8x16xf32> to vector<2x1x16xf32>
    %291 = vector.shape_cast %290 : vector<2x1x16xf32> to vector<2x16xf32>
    %292 = vector.extract_strided_slice %271 {offsets = [0, 32], sizes = [2, 16], strides = [1, 1]} : vector<2x48xf32> to vector<2x16xf32>
    %293 = vector.broadcast %23 : vector<1x16xf32> to vector<2x16xf32>
    %294 = arith.addf %292, %293 : vector<2x16xf32>
    %295 = arith.mulf %280, %294 : vector<2x16xf32>
    %296 = arith.addf %291, %295 : vector<2x16xf32>
    %297 = math.tanh %296 : vector<2x16xf32>
    %cst_59 = arith.constant 1.000000e+00 : f32
    %298 = vector.broadcast %cst_59 : f32 to vector<2x16xf32>
    %299 = arith.subf %298, %289 : vector<2x16xf32>
    %300 = arith.mulf %299, %297 : vector<2x16xf32>
    %301 = arith.mulf %289, %267 : vector<2x16xf32>
    %302 = arith.addf %300, %301 : vector<2x16xf32>
    %c0_60 = arith.constant 0 : index
    %c7 = arith.constant 7 : index
    %c0_61 = arith.constant 0 : index
    %303 = vector.load %arg11[%c0_60, %c7, %c0_61] : memref<2x8x16xf32, #tpu.memory_space<vmem>>, vector<2x1x16xf32>
    %304 = vector.shape_cast %303 : vector<2x1x16xf32> to vector<2x16xf32>
    %305 = vector.shape_cast %302 : vector<2x16xf32> to vector<2x1x16xf32>
    tpu.vector_store %arg11[%c0_60, %c7, %c0_61], %305 {strides = array<i32>} : memref<2x8x16xf32, #tpu.memory_space<vmem>>, vector<2x1x16xf32>,
    %c0_62 = arith.constant 0 : index
    %c0_63 = arith.constant 0 : index
    %306 = vector.load %arg10[%c0_62, %c0_63] : memref<2x16xf32, #tpu.memory_space<vmem>>, vector<2x16xf32>
    tpu.vector_store %arg10[%c0_62, %c0_63], %302 {strides = array<i32>} : memref<2x16xf32, #tpu.memory_space<vmem>>, vector<2x16xf32>,
    %c0_64 = arith.constant 0 : index
    %c0_65 = arith.constant 0 : index
    %c0_66 = arith.constant 0 : index
    %307 = vector.load %arg11[%c0_64, %c0_65, %c0_66] : memref<2x8x16xf32, #tpu.memory_space<vmem>>, vector<2x8x16xf32>
    %308 = vector.shape_cast %307 : vector<2x8x16xf32> to vector<16x16xf32>
    %c0_67 = arith.constant 0 : index
    %c0_68 = arith.constant 0 : index
    %309 = vector.load %arg7[%c0_67, %c0_68] : memref<16x128xf32, #tpu.memory_space<vmem>>, vector<16x128xf32>
    %cst_69 = arith.constant dense<0.000000e+00> : vector<16x128xf32>
    %310 = tpu.matmul %308, %309, %cst_69 {dimension_numbers = #tpu.dot_dimension_numbers<[1], [0], [0], [1], [0, 0, 1, 1], [], []>} : vector<16x16xf32>, vector<16x128xf32>, vector<16x128xf32> -> vector<16x128xf32>
    %c0_70 = arith.constant 0 : index
    %c0_71 = arith.constant 0 : index
    %311 = vector.load %arg8[%c0_70, %c0_71] : memref<1x128xf32, #tpu.memory_space<vmem>>, vector<1x128xf32>
    %312 = vector.broadcast %311 : vector<1x128xf32> to vector<16x128xf32>
    %313 = arith.addf %310, %312 : vector<16x128xf32>
    %314 = arith.negf %313 : vector<16x128xf32>
    %315 = math.exp %314 : vector<16x128xf32>
    %cst_72 = arith.constant 1.000000e+00 : f32
    %316 = vector.broadcast %cst_72 : f32 to vector<16x128xf32>
    %317 = arith.addf %316, %315 : vector<16x128xf32>
    %318 = arith.divf %316, %317 : vector<16x128xf32>
    %319 = vector.shape_cast %318 : vector<16x128xf32> to vector<2x8x128xf32>
    %c0_73 = arith.constant 0 : index
    %c0_74 = arith.constant 0 : index
    %c0_75 = arith.constant 0 : index
    %320 = vector.load %arg9[%c0_73, %c0_74, %c0_75] : memref<2x8x128xf32, #tpu.memory_space<vmem>>, vector<2x8x128xf32>
    tpu.vector_store %arg9[%c0_73, %c0_74, %c0_75], %319 {strides = array<i32>} : memref<2x8x128xf32, #tpu.memory_space<vmem>>, vector<2x8x128xf32>,
    return
  }
  func.func @transform_0(%arg0: i32, %arg1: i32) -> (i32, i32, i32) {
    %c0_i32 = arith.constant 0 : i32
    %c0_i32_0 = arith.constant 0 : i32
    return %arg0, %arg1, %c0_i32 : i32, i32, i32
  }
  func.func @transform_1(%arg0: i32, %arg1: i32) -> (i32, i32) {
    %c0_i32 = arith.constant 0 : i32
    %c0_i32_0 = arith.constant 0 : i32
    %c0_i32_1 = arith.constant 0 : i32
    return %c0_i32, %c0_i32_0 : i32, i32
  }
  func.func @transform_2(%arg0: i32, %arg1: i32) -> (i32, i32) {
    %c0_i32 = arith.constant 0 : i32
    %c0_i32_0 = arith.constant 0 : i32
    %c0_i32_1 = arith.constant 0 : i32
    return %c0_i32, %c0_i32_0 : i32, i32
  }
  func.func @transform_3(%arg0: i32, %arg1: i32) -> (i32, i32) {
    %c0_i32 = arith.constant 0 : i32
    %c0_i32_0 = arith.constant 0 : i32
    %c0_i32_1 = arith.constant 0 : i32
    return %c0_i32, %c0_i32_0 : i32, i32
  }
  func.func @transform_4(%arg0: i32, %arg1: i32) -> (i32, i32) {
    %c0_i32 = arith.constant 0 : i32
    %c0_i32_0 = arith.constant 0 : i32
    %c0_i32_1 = arith.constant 0 : i32
    return %c0_i32, %c0_i32_0 : i32, i32
  }
  func.func @transform_5(%arg0: i32, %arg1: i32) -> (i32, i32) {
    %c0_i32 = arith.constant 0 : i32
    %c0_i32_0 = arith.constant 0 : i32
    %c0_i32_1 = arith.constant 0 : i32
    return %c0_i32, %c0_i32_0 : i32, i32
  }
  func.func @transform_6(%arg0: i32, %arg1: i32) -> (i32, i32) {
    %c0_i32 = arith.constant 0 : i32
    %c0_i32_0 = arith.constant 0 : i32
    %c0_i32_1 = arith.constant 0 : i32
    return %c0_i32, %c0_i32_0 : i32, i32
  }
  func.func @transform_7(%arg0: i32, %arg1: i32) -> (i32, i32, i32) {
    %c0_i32 = arith.constant 0 : i32
    %c0_i32_0 = arith.constant 0 : i32
    return %arg0, %arg1, %c0_i32 : i32, i32, i32
  }
}

</mosaic_0001>

<bundles_post_ra>
// kernel: tpu_custom_call.1
= control target key start
LH: loop header
LB: loop body
LE: loop exit
PB: predicated region body
PF: predicated region fallthrough
CT: control target
= control target key end

     0   :  { %v1848_v4 = vmov 0.0|0.0   ;;  %vm1849_vm0 = vmmov 0   ;;  %v1850_v8 = vmov 0.0   ;;  %vm31_vm1 = vcmask 123904   ;;  %s2252_s0 = inlined_call_operand.vmem [shape: f32[2,8,128], index: 0, kind: input, shape index: {}]   ;;  %s2253_s1 = inlined_call_operand.vmem [shape: f32[128,48], index: 1, kind: input, shape index: {}]   ;;  %s2254_s2 = inlined_call_operand.vmem [shape: f32[1,48], index: 2, kind: input, shape index: {}]   ;;  %s2255_s3 = inlined_call_operand.vmem [shape: f32[16,48], index: 3, kind: input, shape index: {}]   ;;  %s2256_s4 = inlined_call_operand.vmem [shape: f32[1,48], index: 4, kind: input, shape index: {}]   ;;  %s2257_s5 = inlined_call_operand.vmem [shape: f32[16,128], index: 5, kind: input, shape index: {}]   ;;  %s2258_s6 = inlined_call_operand.vmem [shape: f32[1,128], index: 6, kind: input, shape index: {}]   ;;  %s2259_s7 = inlined_call_operand.hbm [shape: f32[2,8,128], index: 7, kind: output, shape index: {}]  }
   0x1   :  { %v35_v0 = vld [vmem:[%s2253_s1] sm:$0xff]  ;;  %v36_v1 = vld [vmem:[%s2253_s1 + $0x8] sm:$0xff]  ;;  %1682 = vmatprep.subr.bf16.mxu1 %v1848_v4  ;;  %v37_v6 = vld [vmem:[%s2253_s1 + $0x10] sm:$0xff]  ;;  %1591 = vmatprep.mubr.msk.f32.mxu1 %vm1849_vm0, %v1850_v8  ;;  %32 = vst.msk [vmem:[#allocation2] sm:$0x3] %vm31_vm1, %v1850_v8 }
   0x2   :  { %v142_v2 = vld [vmem:[%s2255_s3] sm:$0xff]  ;;  %v1650_v3 = vpack.c.bf16 %v36_v1, %v35_v0  ;;  %v143_v5 = vld [vmem:[%s2255_s3 + $0x8] sm:$0xff]  ;;  %v38_v7 = vld [vmem:[%s2253_s1 + $0x18] sm:$0xff] }
   0x3   :  { %v1919_v9 = vpack.c.bf16 %v143_v5, %v142_v2  ;;  %v1654_v10 = vpack.c.bf16 %v38_v7, %v37_v6  ;;  %v39_v11 = vld [vmem:[%s2253_s1 + $0x20] sm:$0xff]  ;;  %v40_v12 = vld [vmem:[%s2253_s1 + $0x28] sm:$0xff]  ;;  %v41_v14 = vld [vmem:[%s2253_s1 + $0x30] sm:$0xff] }
   0x4   :  { %1651 = vmatprep.subr.bf16.mxu0 %v1650_v3  ;;  %v1658_v13 = vpack.c.bf16 %v40_v12, %v39_v11  ;;  %v42_v15 = vld [vmem:[%s2253_s1 + $0x38] sm:$0xff]  ;;  %v33_v16 = vld [vmem:[%s2252_s0] sm:$0xff] }
   0x5   :  { %1653 = vmatpush3.bf16.msra.mxu0 %v1650_v3  ;;  %1684 = vmatpush3.bf16.msra.mxu1 %v1919_v9 }
   0x6   :  { %1655 = vmatprep.subr.bf16.mxu0 %v1654_v10  ;;  %1685 = vmatprep.subr.bf16.mxu1 %v1848_v4 }
   0x7   :  { %12 = vsyncpa [#allocation5], 0  ;;  %vm145_vm2 = vcmask 130048   ;;  %1584 = vmatprep.mubr.f32.mxu0 %v33_v16  ;;  %v1662_v18 = vpack.c.bf16 %v42_v15, %v41_v14  ;;  %v43_v19 = vld [vmem:[%s2253_s1 + $0x40] sm:$0xff]  ;;  %v44_v20 = vld [vmem:[%s2253_s1 + $0x48] sm:$0xff]  ;;  %s1854_s19 = smov 112  }
   0x8   :  { %v1939_v17 = vld [vmem:[#allocation2] sm:$0x3]  ;;  %v1666_v21 = vpack.c.bf16 %v44_v20, %v43_v19  ;;  %v45_v22 = vld [vmem:[%s2253_s1 + $0x50] sm:$0xff]  ;;  %v46_v23 = vld [vmem:[%s2253_s1 + $0x58] sm:$0xff]  ;;  %vm295_vm3 = vcmask 1041409   ;;  %vm439_vm4 = vcmask 123905  }
   0x9   :  { %1657 = vmatpush3.bf16.msra.mxu0 %v1654_v10  ;;  %1592 = vmatmul.mubr.msk.f32.vlgmr.msra.gmra.mrb[0].mxu1 %vm145_vm2, %v1939_v17  ;;  %v1670_v24 = vpack.c.bf16 %v46_v23, %v45_v22  ;;  %v47_v25 = vld [vmem:[%s2253_s1 + $0x60] sm:$0xff]  ;;  %v48_v26 = vld [vmem:[%s2253_s1 + $0x68] sm:$0xff]  ;;  %v49_v28 = vld [vmem:[%s2253_s1 + $0x70] sm:$0xff]  ;;  %v272_v59 = vrot.slane %v1939_v17, 1  ;;  %vm291_vm5 = vcmask 122880   ;;  %vm740_vm6 = vcmask 125955  }
   0xa   :  { %1659 = vmatprep.subr.bf16.mxu0 %v1658_v13  ;;  %1687 = vmatpush3.bf16.msra.mxu1 %v1919_v9  ;;  %v1674_v27 = vpack.c.bf16 %v48_v26, %v47_v25  ;;  %v50_v29 = vld [vmem:[%s2253_s1 + $0x78] sm:$0xff]  ;;  %v34_v31 = vld [vmem:[%s2252_s0 + $0x8] sm:$0xff]  ;;  %v1977_v32 = vld [vmem:[%s2256_s4] ss:$0 sm:$0xff]  ;;  %s1851_s1 = smov 96   ;;  %s1853_s4 = smov 16  }
   0xb   :  { %1598 = vmatprep.mubr.msk.f32.mxu1 %vm1849_vm0, %v1850_v8  ;;  %1688 = vmatprep.subr.bf16.mxu1 %v1848_v4  ;;  %v1678_v30 = vpack.c.bf16 %v50_v29, %v49_v28  ;;  %v1475_v39 = vld [vmem:[%s2254_s2] ss:$0 sm:$0xff]  ;;  %s1852_s2 = smov 32   ;;  %vm589_vm7 = vcmask 124930   ;;  %vm1042_vm8 = vcmask 128005   ;;  %vm891_vm9 = vcmask 126980  }
   0xc   :  { %vm1193_vm10 = vcmask 129030   ;;  %vm1344_vm11 = vcmask 130055   ;;  %s1855_s25 = smov [#allocation4]  }
   0xd   :  { %1661 = vmatpush3.bf16.msra.mxu0 %v1658_v13  ;;  %s1464_s26 = sshll.u32 %s1855_s25, 4  ;;  %s1465_s26 = int_to_ptr.vmem [resolvable:$true] %s1464_s26 }
   0xe   :  { %1663 = vmatprep.subr.bf16.mxu0 %v1662_v18  ;;  %p1829_p1 = scmp.lt.s32.totalorder %s1465_s26, %s1465_s26 }
  0x11   :  { %1665 = vmatpush3.bf16.msra.mxu0 %v1662_v18 }
  0x12   :  { %1667 = vmatprep.subr.bf16.mxu0 %v1666_v21 }
  0x15   :  { %1669 = vmatpush3.bf16.msra.mxu0 %v1666_v21 }
  0x16   :  { %1671 = vmatprep.subr.bf16.mxu0 %v1670_v24 }
  0x19   :  { %1673 = vmatpush3.bf16.msra.mxu0 %v1670_v24 }
  0x1a   :  { %1675 = vmatprep.subr.bf16.mxu0 %v1674_v27 }
  0x1d   :  { %1677 = vmatpush3.bf16.msra.mxu0 %v1674_v27 }
  0x1e   :  { %1679 = vmatprep.subr.bf16.mxu0 %v1678_v30 }
  0x21   :  { %1681 = vmatpush3.bf16.msra.mxu0 %v1678_v30 }
  0x24   :  { %1585 = vmatmul.mubr.f32.vlgmr.msra.gmra.mrb[0].mxu0 %v34_v31 }
  0xdc   :  { %v215_v33 = vpop.f32.mrb[0].mxu1 }
  0xdd   :  { %v1593_v34 = vpop.f32.mrb[1].mxu1  ;;  %v237_v35 = vadd.f32 %v1977_v32, %v215_v33  ;;  %v220_v43 = vrot.slane %v215_v33, 1 }
  0xdf   :  { %v239_v36 = vrot.slane %v237_v35, 1 }
  0xe1   :  { %242 = vrot.lane.b32.xlu0 %v239_v36, %s1851_s1 }
  0xe5   :  { %240 = vrot.lane.b32.xlu0 %v237_v35, %s1851_s1 }
  0xf7   :  { %v1586_v37 = vpop.f32.mrb[0].mxu0 }
  0xf8   :  { %v124_v38 = vpop.f32.mrb[1].mxu0  ;;  %v1985_v40 = vadd.f32 %v1586_v37, %v1475_v39 }
  0xf9   :  { %v1991_v42 = vadd.f32 %v1475_v39, %v124_v38 }
  0xfa   :  { %v1989_v41 = vadd.f32 %v1977_v32, %v1985_v40 }
  0xfb   :  { %v1995_v44 = vadd.f32 %v1977_v32, %v1991_v42 }
  0xfc   :  { %v224_v45 = vadd.f32 %v220_v43, %v1989_v41 }
  0xfd   :  { %v223_v47 = vadd.f32 %v215_v33, %v1995_v44 }
  0xfe   :  { %v1479_v46 = vmul.f32 -1.442695, %v224_v45 }
  0xff   :  { %v1478_v48 = vmul.f32 -1.442695, %v223_v47 }
 0x100   :  { %1720 = vpow2.f32 %v1479_v46 }
 0x101   :  { %1722 = vpow2.f32 %v1478_v48 }
 0x10a   :  { %v1721_v49 = vpop.eup %1720 }
 0x10b   :  { %v232_v50 = vadd.f32 1.0, %v1721_v49  ;;  %v1723_v51 = vpop.eup %1722 }
 0x10c   :  { %v231_v52 = vadd.f32 1.0, %v1723_v51 }
 0x10d   :  { %1724 = vrcp.f32 %v232_v50 }
 0x10e   :  { %1726 = vrcp.f32 %v231_v52 }
 0x117   :  { %v1725_v53 = vpop.eup %1724 }
 0x118   :  { %v1727_v56 = vpop.eup %1726  ;;  %v261_v3 = vsub.f32 1.0, %v1725_v53 }
 0x119   :  { %v260_v12 = vsub.f32 1.0, %v1727_v56 }
 0x153   :  { %v243_v54 = vpop.permute.xlu0 %242 }
 0x154   :  { %v247_v55 = vmul.f32 %v1725_v53, %v243_v54 }
 0x156   :  { %252 = vrot.lane.b32.xlu1 %v247_v55, %s1852_s2 }
 0x157   :  { %v241_v57 = vpop.permute.xlu0 %240 }
 0x158   :  { %v246_v58 = vmul.f32 %v1727_v56, %v241_v57 }
 0x15a   :  { %250 = vrot.lane.b32.xlu1 %v246_v58, %s1852_s2 }
 0x15e   :  { %275 = vrot.lane.b32.xlu1 %v272_v59, %s1853_s4 }
 0x162   :  { %273 = vrot.lane.b32.xlu1 %v1939_v17, %s1853_s4 }
 0x1c8   :  { %v253_v60 = vpop.permute.xlu1 %252 }
 0x1c9   :  { %v257_v61 = vadd.f32 %v253_v60, %v1985_v40 }
 0x1cb   :  { %1728 = vtanh.f32 %v257_v61 }
 0x1cc   :  { %v251_v62 = vpop.permute.xlu1 %250 }
 0x1cd   :  { %v256_v63 = vadd.f32 %v251_v62, %v1991_v42 }
 0x1cf   :  { %1730 = vtanh.f32 %v256_v63 }
 0x1d0   :  { %v276_v2 = vpop.permute.xlu1 %275 }
 0x1d1   :  { %v280_v6 = vmul.f32 %v1725_v53, %v276_v2 }
 0x1d4   :  { %v274_v10 = vpop.permute.xlu1 %273 }
 0x1d5   :  { %v1729_v0 = vpop.eup %1728  ;;  %v279_v14 = vmul.f32 %v1727_v56, %v274_v10 }
 0x1d6   :  { %266 = vrot.lane.b32.xlu0 %v1729_v0, %s1854_s19 }
 0x1d9   :  { %v1731_v1 = vpop.eup %1730 }
 0x1da   :  { %264 = vrot.lane.b32.xlu0 %v1731_v1, %s1854_s19 }
 0x248   :  { %v267_v5 = vpop.permute.xlu0 %266 }
 0x249   :  { %v271_v7 = vmul.f32 %v267_v5, %v261_v3 }
 0x24b   :  { %v2007_v11 = vadd.f32 %v280_v6, %v271_v7 }
 0x24c   :  { %v265_v13 = vpop.permute.xlu0 %264 }
 0x24d   :  { %v270_v15 = vmul.f32 %v265_v13, %v260_v12  ;;  %v294_v16 = vrot.slane %v2007_v11, 7 }
 0x24f   :  { %v2010_v17 = vadd.f32 %v279_v14, %v270_v15 }
 0x251   :  { %v296_v18 = vsel %vm295_vm3, %v294_v16, %v2010_v17  ;;  %v424_v53 = vrot.slane %v2010_v17, 7 }
 0x252   :  { %297 = vrot.lane.b32.xlu0 %v296_v18, %s1854_s19 }
 0x2c4   :  { %v298_v19 = vpop.permute.xlu0 %297 }
 0x2c5   :  { %1599 = vmatmul.mubr.msk.f32.vlgmr.msra.gmra.mrb[2].mxu1 %vm145_vm2, %v298_v19 }
 0x2c6   :  { %1690 = vmatpush3.bf16.msra.mxu1 %v1919_v9  ;;  %1605 = vmatprep.mubr.msk.f32.mxu1 %vm1849_vm0, %v1850_v8 }
 0x2c7   :  { %1691 = vmatprep.subr.bf16.mxu1 %v1848_v4 }
 0x398   :  { %v367_v20 = vpop.f32.mrb[2].mxu1 }
 0x399   :  { %v389_v21 = vadd.f32 %v1977_v32, %v367_v20  ;;  %v1600_v22 = vpop.f32.mrb[3].mxu1  ;;  %v372_v24 = vrot.slane %v367_v20, 7  ;;  %v376_v25 = vadd.f32 %v367_v20, %v1989_v41 }
 0x39b   :  { %394 = vrot.lane.b32.xlu0 %v389_v21, %s1851_s1  ;;  %v391_v23 = vrot.slane %v389_v21, 7  ;;  %v375_v26 = vadd.f32 %v372_v24, %v1995_v44  ;;  %v1482_v27 = vmul.f32 -1.442695, %v376_v25 }
 0x39d   :  { %392 = vrot.lane.b32.xlu1 %v391_v23, %s1851_s1  ;;  %v1481_v28 = vmul.f32 -1.442695, %v375_v26  ;;  %1732 = vpow2.f32 %v1482_v27 }
 0x39f   :  { %1734 = vpow2.f32 %v1481_v28 }
 0x3a7   :  { %v1733_v29 = vpop.eup %1732 }
 0x3a8   :  { %v384_v31 = vadd.f32 1.0, %v1733_v29 }
 0x3a9   :  { %v1735_v30 = vpop.eup %1734 }
 0x3aa   :  { %v383_v33 = vadd.f32 1.0, %v1735_v30  ;;  %1736 = vrcp.f32 %v384_v31 }
 0x3ac   :  { %1738 = vrcp.f32 %v383_v33 }
 0x3b4   :  { %v1737_v34 = vpop.eup %1736 }
 0x3b5   :  { %v413_v51 = vsub.f32 1.0, %v1737_v34  ;;  %v428_v58 = vmul.f32 %v1737_v34, %v294_v16 }
 0x3b6   :  { %v1739_v37 = vpop.eup %1738 }
 0x3b7   :  { %v412_v52 = vsub.f32 1.0, %v1739_v37  ;;  %v427_v56 = vmul.f32 %v1739_v37, %v424_v53 }
 0x40d   :  { %v395_v35 = vpop.permute.xlu0 %394 }
 0x40e   :  { %v399_v36 = vmul.f32 %v1737_v34, %v395_v35 }
 0x40f   :  { %v393_v38 = vpop.permute.xlu1 %392 }
 0x410   :  { %v398_v39 = vmul.f32 %v1739_v37, %v393_v38  ;;  %404 = vrot.lane.b32.xlu0 %v399_v36, %s1852_s2 }
 0x412   :  { %402 = vrot.lane.b32.xlu1 %v398_v39, %s1852_s2 }
 0x482   :  { %v405_v43 = vpop.permute.xlu0 %404 }
 0x483   :  { %v409_v45 = vadd.f32 %v405_v43, %v1985_v40 }
 0x484   :  { %v403_v46 = vpop.permute.xlu1 %402 }
 0x485   :  { %1740 = vtanh.f32 %v409_v45  ;;  %v408_v47 = vadd.f32 %v403_v46, %v1991_v42 }
 0x487   :  { %1742 = vtanh.f32 %v408_v47 }
 0x48f   :  { %v1741_v48 = vpop.eup %1740 }
 0x490   :  { %418 = vrot.lane.b32.xlu0 %v1741_v48, %s1854_s19 }
 0x491   :  { %v1743_v49 = vpop.eup %1742 }
 0x492   :  { %416 = vrot.lane.b32.xlu1 %v1743_v49, %s1854_s19 }
 0x502   :  { %v419_v50 = vpop.permute.xlu0 %418 }
 0x503   :  { %v423_v55 = vmul.f32 %v419_v50, %v413_v51 }
 0x504   :  { %v417_v54 = vpop.permute.xlu1 %416 }
 0x505   :  { %v422_v57 = vmul.f32 %v417_v54, %v412_v52  ;;  %v2034_v60 = vadd.f32 %v428_v58, %v423_v55 }
 0x507   :  { %v2032_v59 = vadd.f32 %v427_v56, %v422_v57  ;;  %v574_v34 = vrot.slane %v2034_v60, 7 }
 0x509   :  { %v442_v61 = vrot.slane %v2032_v59, 1  ;;  %v573_v37 = vrot.slane %v2032_v59, 7 }
 0x50b   :  { %v443_v62 = vsel %vm295_vm3, %v2034_v60, %v442_v61 }
 0x50c   :  { %444 = vrot.lane.b32.xlu1 %v443_v62, %s1854_s19 }
 0x57e   :  { %v445_v63 = vpop.permute.xlu1 %444 }
 0x57f   :  { %1606 = vmatmul.mubr.msk.f32.vlgmr.msra.gmra.mrb[4].mxu1 %vm145_vm2, %v445_v63 }
 0x580   :  { %1693 = vmatpush3.bf16.msra.mxu1 %v1919_v9  ;;  %1612 = vmatprep.mubr.msk.f32.mxu1 %vm1849_vm0, %v1850_v8 }
 0x581   :  { %1694 = vmatprep.subr.bf16.mxu1 %v1848_v4 }
 0x652   :  { %v514_v0 = vpop.f32.mrb[4].mxu1 }
 0x653   :  { %v537_v1 = vadd.f32 %v1977_v32, %v514_v0  ;;  %v1607_v2 = vpop.f32.mrb[5].mxu1  ;;  %v519_v6 = vrot.slane %v514_v0, 6  ;;  %v520_v7 = vrot.slane %v514_v0, 7 }
 0x655   :  { %v540_v3 = vrot.slane %v537_v1, 7  ;;  %v539_v5 = vrot.slane %v537_v1, 6  ;;  %v523_v10 = vadd.f32 %v519_v6, %v1995_v44  ;;  %v524_v12 = vadd.f32 %v520_v7, %v1989_v41 }
 0x657   :  { %543 = vrot.lane.b32.xlu1 %v540_v3, %s1851_s1  ;;  %541 = vrot.lane.b32.xlu0 %v539_v5, %s1851_s1  ;;  %v1484_v13 = vmul.f32 -1.442695, %v523_v10  ;;  %v1485_v14 = vmul.f32 -1.442695, %v524_v12 }
 0x659   :  { %1744 = vpow2.f32 %v1484_v13 }
 0x65a   :  { %1746 = vpow2.f32 %v1485_v14 }
 0x663   :  { %v1745_v15 = vpop.eup %1744 }
 0x664   :  { %v1747_v16 = vpop.eup %1746  ;;  %v531_v18 = vadd.f32 1.0, %v1745_v15 }
 0x665   :  { %v532_v19 = vadd.f32 1.0, %v1747_v16 }
 0x666   :  { %1748 = vrcp.f32 %v531_v18 }
 0x667   :  { %1750 = vrcp.f32 %v532_v19 }
 0x670   :  { %v1749_v20 = vpop.eup %1748 }
 0x671   :  { %v1751_v21 = vpop.eup %1750  ;;  %v561_v36 = vsub.f32 1.0, %v1749_v20  ;;  %v577_v45 = vmul.f32 %v1749_v20, %v573_v37 }
 0x672   :  { %v562_v33 = vsub.f32 1.0, %v1751_v21  ;;  %v578_v38 = vmul.f32 %v1751_v21, %v574_v34 }
 0x6c9   :  { %v544_v22 = vpop.permute.xlu1 %543  ;;  %v542_v23 = vpop.permute.xlu0 %541 }
 0x6ca   :  { %v548_v24 = vmul.f32 %v1751_v21, %v544_v22  ;;  %v547_v25 = vmul.f32 %v1749_v20, %v542_v23 }
 0x6cc   :  { %553 = vrot.lane.b32.xlu1 %v548_v24, %s1852_s2  ;;  %551 = vrot.lane.b32.xlu0 %v547_v25, %s1852_s2 }
 0x73e   :  { %v554_v26 = vpop.permute.xlu1 %553  ;;  %v552_v27 = vpop.permute.xlu0 %551 }
 0x73f   :  { %v558_v28 = vadd.f32 %v554_v26, %v1985_v40  ;;  %v557_v29 = vadd.f32 %v552_v27, %v1991_v42 }
 0x741   :  { %1752 = vtanh.f32 %v558_v28 }
 0x742   :  { %1754 = vtanh.f32 %v557_v29 }
 0x74b   :  { %v1753_v30 = vpop.eup %1752 }
 0x74c   :  { %v1755_v31 = vpop.eup %1754  ;;  %567 = vrot.lane.b32.xlu1 %v1753_v30, %s1854_s19 }
 0x74d   :  { %565 = vrot.lane.b32.xlu0 %v1755_v31, %s1854_s19 }
 0x7be   :  { %v568_v35 = vpop.permute.xlu1 %567 }
 0x7bf   :  { %v572_v39 = vmul.f32 %v568_v35, %v562_v33  ;;  %v566_v43 = vpop.permute.xlu0 %565 }
 0x7c0   :  { %v571_v46 = vmul.f32 %v566_v43, %v561_v36 }
 0x7c1   :  { %v2058_v47 = vadd.f32 %v578_v38, %v572_v39 }
 0x7c2   :  { %v2060_v48 = vadd.f32 %v577_v45, %v571_v46 }
 0x7c3   :  { %v593_v49 = vrot.slane %v2058_v47, 1  ;;  %v725_v24 = vrot.slane %v2058_v47, 7 }
 0x7c4   :  { %v592_v50 = vrot.slane %v2060_v48, 2  ;;  %v724_v27 = vrot.slane %v2060_v48, 7 }
 0x7c6   :  { %v594_v51 = vsel %vm295_vm3, %v593_v49, %v592_v50 }
 0x7c7   :  { %595 = vrot.lane.b32.xlu0 %v594_v51, %s1854_s19 }
 0x839   :  { %v596_v52 = vpop.permute.xlu0 %595 }
 0x83a   :  { %1613 = vmatmul.mubr.msk.f32.vlgmr.msra.gmra.mrb[6].mxu1 %vm145_vm2, %v596_v52 }
 0x83b   :  { %1696 = vmatpush3.bf16.msra.mxu1 %v1919_v9  ;;  %1619 = vmatprep.mubr.msk.f32.mxu1 %vm1849_vm0, %v1850_v8 }
 0x83c   :  { %1697 = vmatprep.subr.bf16.mxu1 %v1848_v4 }
 0x90d   :  { %v665_v53 = vpop.f32.mrb[6].mxu1 }
 0x90e   :  { %v688_v54 = vadd.f32 %v1977_v32, %v665_v53  ;;  %v1614_v55 = vpop.f32.mrb[7].mxu1  ;;  %v670_v58 = vrot.slane %v665_v53, 5  ;;  %v671_v61 = vrot.slane %v665_v53, 6 }
 0x910   :  { %v691_v56 = vrot.slane %v688_v54, 6  ;;  %v690_v57 = vrot.slane %v688_v54, 5  ;;  %v674_v62 = vadd.f32 %v670_v58, %v1995_v44  ;;  %v675_v63 = vadd.f32 %v671_v61, %v1989_v41 }
 0x912   :  { %694 = vrot.lane.b32.xlu0 %v691_v56, %s1851_s1  ;;  %692 = vrot.lane.b32.xlu1 %v690_v57, %s1851_s1  ;;  %v1487_v0 = vmul.f32 -1.442695, %v674_v62  ;;  %v1488_v1 = vmul.f32 -1.442695, %v675_v63 }
 0x914   :  { %1756 = vpow2.f32 %v1487_v0 }
 0x915   :  { %1758 = vpow2.f32 %v1488_v1 }
 0x91e   :  { %v1757_v2 = vpop.eup %1756 }
 0x91f   :  { %v1759_v3 = vpop.eup %1758  ;;  %v682_v5 = vadd.f32 1.0, %v1757_v2 }
 0x920   :  { %v683_v6 = vadd.f32 1.0, %v1759_v3 }
 0x921   :  { %1760 = vrcp.f32 %v682_v5 }
 0x922   :  { %1762 = vrcp.f32 %v683_v6 }
 0x92b   :  { %v1761_v7 = vpop.eup %1760 }
 0x92c   :  { %v1763_v10 = vpop.eup %1762  ;;  %v712_v26 = vsub.f32 1.0, %v1761_v7  ;;  %v728_v31 = vmul.f32 %v1761_v7, %v724_v27 }
 0x92d   :  { %v713_v23 = vsub.f32 1.0, %v1763_v10  ;;  %v729_v28 = vmul.f32 %v1763_v10, %v725_v24 }
 0x984   :  { %v695_v12 = vpop.permute.xlu0 %694  ;;  %v693_v13 = vpop.permute.xlu1 %692 }
 0x985   :  { %v699_v14 = vmul.f32 %v1763_v10, %v695_v12  ;;  %v698_v15 = vmul.f32 %v1761_v7, %v693_v13 }
 0x987   :  { %704 = vrot.lane.b32.xlu0 %v699_v14, %s1852_s2  ;;  %702 = vrot.lane.b32.xlu1 %v698_v15, %s1852_s2 }
 0x9f9   :  { %v705_v16 = vpop.permute.xlu0 %704  ;;  %v703_v18 = vpop.permute.xlu1 %702 }
 0x9fa   :  { %v709_v19 = vadd.f32 %v705_v16, %v1985_v40  ;;  %v708_v20 = vadd.f32 %v703_v18, %v1991_v42 }
 0x9fc   :  { %1764 = vtanh.f32 %v709_v19 }
 0x9fd   :  { %1766 = vtanh.f32 %v708_v20 }
 0xa06   :  { %v1765_v21 = vpop.eup %1764 }
 0xa07   :  { %v1767_v22 = vpop.eup %1766  ;;  %718 = vrot.lane.b32.xlu0 %v1765_v21, %s1854_s19 }
 0xa08   :  { %716 = vrot.lane.b32.xlu1 %v1767_v22, %s1854_s19 }
 0xa79   :  { %v719_v25 = vpop.permute.xlu0 %718 }
 0xa7a   :  { %v723_v29 = vmul.f32 %v719_v25, %v713_v23  ;;  %v717_v30 = vpop.permute.xlu1 %716 }
 0xa7b   :  { %v722_v33 = vmul.f32 %v717_v30, %v712_v26 }
 0xa7c   :  { %v2084_v34 = vadd.f32 %v729_v28, %v723_v29 }
 0xa7d   :  { %v2086_v35 = vadd.f32 %v728_v31, %v722_v33 }
 0xa7e   :  { %v744_v36 = vrot.slane %v2084_v34, 2  ;;  %v876_v16 = vrot.slane %v2084_v34, 7 }
 0xa7f   :  { %v743_v37 = vrot.slane %v2086_v35, 3  ;;  %v875_v20 = vrot.slane %v2086_v35, 7 }
 0xa81   :  { %v745_v38 = vsel %vm295_vm3, %v744_v36, %v743_v37 }
 0xa82   :  { %746 = vrot.lane.b32.xlu1 %v745_v38, %s1854_s19 }
 0xaf4   :  { %v747_v39 = vpop.permute.xlu1 %746 }
 0xaf5   :  { %1620 = vmatmul.mubr.msk.f32.vlgmr.msra.gmra.mrb[8].mxu1 %vm145_vm2, %v747_v39 }
 0xaf6   :  { %1699 = vmatpush3.bf16.msra.mxu1 %v1919_v9  ;;  %1626 = vmatprep.mubr.msk.f32.mxu1 %vm1849_vm0, %v1850_v8 }
 0xaf7   :  { %1700 = vmatprep.subr.bf16.mxu1 %v1848_v4 }
 0xbc8   :  { %v816_v43 = vpop.f32.mrb[8].mxu1 }
 0xbc9   :  { %v839_v45 = vadd.f32 %v1977_v32, %v816_v43  ;;  %v1621_v46 = vpop.f32.mrb[9].mxu1  ;;  %v821_v51 = vrot.slane %v816_v43, 4  ;;  %v822_v52 = vrot.slane %v816_v43, 5 }
 0xbcb   :  { %v842_v49 = vrot.slane %v839_v45, 5  ;;  %v841_v50 = vrot.slane %v839_v45, 4  ;;  %v825_v53 = vadd.f32 %v821_v51, %v1995_v44  ;;  %v826_v54 = vadd.f32 %v822_v52, %v1989_v41 }
 0xbcd   :  { %845 = vrot.lane.b32.xlu1 %v842_v49, %s1851_s1  ;;  %843 = vrot.lane.b32.xlu0 %v841_v50, %s1851_s1  ;;  %v1490_v55 = vmul.f32 -1.442695, %v825_v53  ;;  %v1491_v56 = vmul.f32 -1.442695, %v826_v54 }
 0xbcf   :  { %1768 = vpow2.f32 %v1490_v55 }
 0xbd0   :  { %1770 = vpow2.f32 %v1491_v56 }
 0xbd9   :  { %v1769_v57 = vpop.eup %1768 }
 0xbda   :  { %v1771_v58 = vpop.eup %1770  ;;  %v833_v61 = vadd.f32 1.0, %v1769_v57 }
 0xbdb   :  { %v834_v62 = vadd.f32 1.0, %v1771_v58 }
 0xbdc   :  { %1772 = vrcp.f32 %v833_v61 }
 0xbdd   :  { %1774 = vrcp.f32 %v834_v62 }
 0xbe6   :  { %v1773_v63 = vpop.eup %1772 }
 0xbe7   :  { %v1775_v0 = vpop.eup %1774  ;;  %v863_v19 = vsub.f32 1.0, %v1773_v63  ;;  %v879_v24 = vmul.f32 %v1773_v63, %v875_v20 }
 0xbe8   :  { %v864_v15 = vsub.f32 1.0, %v1775_v0  ;;  %v880_v21 = vmul.f32 %v1775_v0, %v876_v16 }
 0xc3f   :  { %v846_v1 = vpop.permute.xlu1 %845  ;;  %v844_v2 = vpop.permute.xlu0 %843 }
 0xc40   :  { %v850_v3 = vmul.f32 %v1775_v0, %v846_v1  ;;  %v849_v5 = vmul.f32 %v1773_v63, %v844_v2 }
 0xc42   :  { %855 = vrot.lane.b32.xlu1 %v850_v3, %s1852_s2  ;;  %853 = vrot.lane.b32.xlu0 %v849_v5, %s1852_s2 }
 0xcb4   :  { %v856_v6 = vpop.permute.xlu1 %855  ;;  %v854_v7 = vpop.permute.xlu0 %853 }
 0xcb5   :  { %v860_v10 = vadd.f32 %v856_v6, %v1985_v40  ;;  %v859_v12 = vadd.f32 %v854_v7, %v1991_v42 }
 0xcb7   :  { %1776 = vtanh.f32 %v860_v10 }
 0xcb8   :  { %1778 = vtanh.f32 %v859_v12 }
 0xcc1   :  { %v1777_v13 = vpop.eup %1776 }
 0xcc2   :  { %v1779_v14 = vpop.eup %1778  ;;  %869 = vrot.lane.b32.xlu1 %v1777_v13, %s1854_s19 }
 0xcc3   :  { %867 = vrot.lane.b32.xlu0 %v1779_v14, %s1854_s19 }
 0xd34   :  { %v870_v18 = vpop.permute.xlu1 %869 }
 0xd35   :  { %v874_v22 = vmul.f32 %v870_v18, %v864_v15  ;;  %v868_v23 = vpop.permute.xlu0 %867 }
 0xd36   :  { %v873_v25 = vmul.f32 %v868_v23, %v863_v19 }
 0xd37   :  { %v2110_v26 = vadd.f32 %v880_v21, %v874_v22 }
 0xd38   :  { %v2112_v27 = vadd.f32 %v879_v24, %v873_v25 }
 0xd39   :  { %v895_v28 = vrot.slane %v2110_v26, 3  ;;  %v1027_v7 = vrot.slane %v2110_v26, 7 }
 0xd3a   :  { %v894_v29 = vrot.slane %v2112_v27, 4  ;;  %v1026_v13 = vrot.slane %v2112_v27, 7 }
 0xd3c   :  { %v896_v30 = vsel %vm295_vm3, %v895_v28, %v894_v29 }
 0xd3d   :  { %897 = vrot.lane.b32.xlu0 %v896_v30, %s1854_s19 }
 0xdaf   :  { %v898_v31 = vpop.permute.xlu0 %897 }
 0xdb0   :  { %1627 = vmatmul.mubr.msk.f32.vlgmr.msra.gmra.mrb[10].mxu1 %vm145_vm2, %v898_v31 }
 0xdb1   :  { %1702 = vmatpush3.bf16.msra.mxu1 %v1919_v9  ;;  %1633 = vmatprep.mubr.msk.f32.mxu1 %vm1849_vm0, %v1850_v8 }
 0xdb2   :  { %1703 = vmatprep.subr.bf16.mxu1 %v1848_v4 }
 0xe83   :  { %v967_v33 = vpop.f32.mrb[10].mxu1 }
 0xe84   :  { %v990_v36 = vadd.f32 %v1977_v32, %v967_v33  ;;  %v1628_v37 = vpop.f32.mrb[11].mxu1  ;;  %v972_v43 = vrot.slane %v967_v33, 3  ;;  %v973_v45 = vrot.slane %v967_v33, 4 }
 0xe86   :  { %v993_v38 = vrot.slane %v990_v36, 4  ;;  %v992_v39 = vrot.slane %v990_v36, 3  ;;  %v976_v46 = vadd.f32 %v972_v43, %v1995_v44  ;;  %v977_v49 = vadd.f32 %v973_v45, %v1989_v41 }
 0xe88   :  { %996 = vrot.lane.b32.xlu0 %v993_v38, %s1851_s1  ;;  %994 = vrot.lane.b32.xlu1 %v992_v39, %s1851_s1  ;;  %v1493_v50 = vmul.f32 -1.442695, %v976_v46  ;;  %v1494_v51 = vmul.f32 -1.442695, %v977_v49 }
 0xe8a   :  { %1780 = vpow2.f32 %v1493_v50 }
 0xe8b   :  { %1782 = vpow2.f32 %v1494_v51 }
 0xe94   :  { %v1781_v4 = vpop.eup %1780 }
 0xe95   :  { %v1783_v52 = vpop.eup %1782  ;;  %v984_v53 = vadd.f32 1.0, %v1781_v4 }
 0xe96   :  { %v985_v54 = vadd.f32 1.0, %v1783_v52 }
 0xe97   :  { %1784 = vrcp.f32 %v984_v53 }
 0xe98   :  { %1786 = vrcp.f32 %v985_v54 }
 0xea1   :  { %v1785_v55 = vpop.eup %1784 }
 0xea2   :  { %v1787_v56 = vpop.eup %1786  ;;  %v1014_v12 = vsub.f32 1.0, %v1785_v55  ;;  %v1030_v18 = vmul.f32 %v1785_v55, %v1026_v13 }
 0xea3   :  { %v1015_v6 = vsub.f32 1.0, %v1787_v56  ;;  %v1031_v14 = vmul.f32 %v1787_v56, %v1027_v7 }
 0xefa   :  { %v997_v57 = vpop.permute.xlu0 %996  ;;  %v995_v58 = vpop.permute.xlu1 %994 }
 0xefb   :  { %v1001_v61 = vmul.f32 %v1787_v56, %v997_v57  ;;  %v1000_v62 = vmul.f32 %v1785_v55, %v995_v58 }
 0xefd   :  { %1006 = vrot.lane.b32.xlu0 %v1001_v61, %s1852_s2  ;;  %1004 = vrot.lane.b32.xlu1 %v1000_v62, %s1852_s2 }
 0xf6f   :  { %v1007_v63 = vpop.permute.xlu0 %1006  ;;  %v1005_v0 = vpop.permute.xlu1 %1004 }
 0xf70   :  { %v1011_v1 = vadd.f32 %v1007_v63, %v1985_v40  ;;  %v1010_v2 = vadd.f32 %v1005_v0, %v1991_v42 }
 0xf72   :  { %1788 = vtanh.f32 %v1011_v1 }
 0xf73   :  { %1790 = vtanh.f32 %v1010_v2 }
 0xf7c   :  { %v1789_v3 = vpop.eup %1788 }
 0xf7d   :  { %v1791_v5 = vpop.eup %1790  ;;  %1020 = vrot.lane.b32.xlu0 %v1789_v3, %s1854_s19 }
 0xf7e   :  { %1018 = vrot.lane.b32.xlu1 %v1791_v5, %s1854_s19 }
 0xfef   :  { %v1021_v10 = vpop.permute.xlu0 %1020 }
 0xff0   :  { %v1025_v15 = vmul.f32 %v1021_v10, %v1015_v6  ;;  %v1019_v16 = vpop.permute.xlu1 %1018 }
 0xff1   :  { %v1024_v19 = vmul.f32 %v1019_v16, %v1014_v12 }
 0xff2   :  { %v2136_v20 = vadd.f32 %v1031_v14, %v1025_v15 }
 0xff3   :  { %v2138_v21 = vadd.f32 %v1030_v18, %v1024_v19 }
 0xff4   :  { %v1046_v22 = vrot.slane %v2136_v20, 4  ;;  %v1178_v0 = vrot.slane %v2136_v20, 7 }
 0xff5   :  { %v1045_v23 = vrot.slane %v2138_v21, 5  ;;  %v1177_v3 = vrot.slane %v2138_v21, 7 }
 0xff7   :  { %v1047_v24 = vsel %vm295_vm3, %v1046_v22, %v1045_v23 }
 0xff8   :  { %1048 = vrot.lane.b32.xlu1 %v1047_v24, %s1854_s19 }
0x106a   :  { %v1049_v25 = vpop.permute.xlu1 %1048 }
0x106b   :  { %1634 = vmatmul.mubr.msk.f32.vlgmr.msra.gmra.mrb[12].mxu1 %vm145_vm2, %v1049_v25 }
0x106c   :  { %1705 = vmatpush3.bf16.msra.mxu1 %v1919_v9  ;;  %1640 = vmatprep.mubr.msk.f32.mxu1 %vm1849_vm0, %v1850_v8 }
0x113e   :  { %v1118_v28 = vpop.f32.mrb[12].mxu1 }
0x113f   :  { %v1141_v29 = vadd.f32 %v1977_v32, %v1118_v28  ;;  %v1635_v30 = vpop.f32.mrb[13].mxu1  ;;  %v1123_v36 = vrot.slane %v1118_v28, 2  ;;  %v1124_v37 = vrot.slane %v1118_v28, 3 }
0x1141   :  { %v1144_v31 = vrot.slane %v1141_v29, 3  ;;  %v1143_v33 = vrot.slane %v1141_v29, 2  ;;  %v1127_v38 = vadd.f32 %v1123_v36, %v1995_v44  ;;  %v1128_v39 = vadd.f32 %v1124_v37, %v1989_v41 }
0x1143   :  { %1147 = vrot.lane.b32.xlu1 %v1144_v31, %s1851_s1  ;;  %1145 = vrot.lane.b32.xlu0 %v1143_v33, %s1851_s1  ;;  %v1496_v9 = vmul.f32 -1.442695, %v1127_v38  ;;  %v1497_v43 = vmul.f32 -1.442695, %v1128_v39 }
0x1145   :  { %1792 = vpow2.f32 %v1496_v9 }
0x1146   :  { %1794 = vpow2.f32 %v1497_v43 }
0x114f   :  { %v1793_v8 = vpop.eup %1792 }
0x1150   :  { %v1795_v45 = vpop.eup %1794  ;;  %v1135_v46 = vadd.f32 1.0, %v1793_v8 }
0x1151   :  { %v1136_v49 = vadd.f32 1.0, %v1795_v45 }
0x1152   :  { %1796 = vrcp.f32 %v1135_v46 }
0x1153   :  { %1798 = vrcp.f32 %v1136_v49 }
0x115c   :  { %v1797_v50 = vpop.eup %1796 }
0x115d   :  { %v1799_v51 = vpop.eup %1798  ;;  %v1165_v2 = vsub.f32 1.0, %v1797_v50  ;;  %v1181_v10 = vmul.f32 %v1797_v50, %v1177_v3 }
0x115e   :  { %v1166_v63 = vsub.f32 1.0, %v1799_v51  ;;  %v1182_v5 = vmul.f32 %v1799_v51, %v1178_v0 }
0x11b5   :  { %v1148_v4 = vpop.permute.xlu1 %1147  ;;  %v1146_v52 = vpop.permute.xlu0 %1145 }
0x11b6   :  { %v1152_v53 = vmul.f32 %v1799_v51, %v1148_v4  ;;  %v1151_v54 = vmul.f32 %v1797_v50, %v1146_v52 }
0x11b8   :  { %1157 = vrot.lane.b32.xlu1 %v1152_v53, %s1852_s2  ;;  %1155 = vrot.lane.b32.xlu0 %v1151_v54, %s1852_s2 }
0x122a   :  { %v1158_v55 = vpop.permute.xlu1 %1157  ;;  %v1156_v56 = vpop.permute.xlu0 %1155 }
0x122b   :  { %v1162_v57 = vadd.f32 %v1158_v55, %v1985_v40  ;;  %v1161_v58 = vadd.f32 %v1156_v56, %v1991_v42 }
0x122d   :  { %1800 = vtanh.f32 %v1162_v57 }
0x122e   :  { %1802 = vtanh.f32 %v1161_v58 }
0x1237   :  { %v1801_v61 = vpop.eup %1800 }
0x1238   :  { %v1803_v62 = vpop.eup %1802  ;;  %1171 = vrot.lane.b32.xlu1 %v1801_v61, %s1854_s19 }
0x1239   :  { %1169 = vrot.lane.b32.xlu0 %v1803_v62, %s1854_s19 }
0x12aa   :  { %v1172_v1 = vpop.permute.xlu1 %1171 }
0x12ab   :  { %v1176_v6 = vmul.f32 %v1172_v1, %v1166_v63  ;;  %v1170_v7 = vpop.permute.xlu0 %1169 }
0x12ac   :  { %v1175_v12 = vmul.f32 %v1170_v7, %v1165_v2 }
0x12ad   :  { %v2161_v13 = vadd.f32 %v1182_v5, %v1176_v6 }
0x12ae   :  { %v2163_v14 = vadd.f32 %v1181_v10, %v1175_v12 }
0x12af   :  { %v1197_v15 = vrot.slane %v2161_v13, 5 }
0x12b0   :  { %v1196_v16 = vrot.slane %v2163_v14, 6 }
0x12b2   :  { %v1198_v18 = vsel %vm295_vm3, %v1197_v15, %v1196_v16 }
0x12b3   :  { %1199 = vrot.lane.b32.xlu0 %v1198_v18, %s1854_s19  ;;  %v1501_v18 = vld [vmem:[%s2258_s6] ss:$0 sm:$0xff]  ;;  %s1824_s6 = scalar_lea.vmem %s1465_s26, 256 }
0x12b4   :  { %p1825_p0 = scmp.ne.s32.totalorder %s1465_s26, %s1824_s6  ;;  %p1830_p2 = scmp.lt.s32.totalorder %s1824_s6, %s1824_s6 }
0x12b6   :  { %p1831_p3 = por %p1830_p2, %p1829_p1 }
0x12b8   :  { %p1832_p4 = pnand %p1831_p3, %p1825_p0 }
0x1325   :  { %v1200_v19 = vpop.permute.xlu0 %1199 }
0x1326   :  { %1641 = vmatmul.mubr.msk.f32.vlgmr.msra.gmra.mrb[14].mxu1 %vm145_vm2, %v1200_v19 }
0x13f9   :  { %v1269_v22 = vpop.f32.mrb[14].mxu1 }
0x13fa   :  { %v1292_v23 = vadd.f32 %v1977_v32, %v1269_v22  ;;  %v1642_v24 = vpop.f32.mrb[15].mxu1  ;;  %v1274_v29 = vrot.slane %v1269_v22, 1  ;;  %v1275_v30 = vrot.slane %v1269_v22, 2 }
0x13fc   :  { %v1295_v25 = vrot.slane %v1292_v23, 2  ;;  %v1294_v28 = vrot.slane %v1292_v23, 1  ;;  %v1278_v31 = vadd.f32 %v1274_v29, %v1995_v44  ;;  %v1279_v33 = vadd.f32 %v1275_v30, %v1989_v41 }
0x13fe   :  { %1298 = vrot.lane.b32.xlu0 %v1295_v25, %s1851_s1  ;;  %1296 = vrot.lane.b32.xlu1 %v1294_v28, %s1851_s1  ;;  %v1499_v36 = vmul.f32 -1.442695, %v1278_v31  ;;  %v1500_v37 = vmul.f32 -1.442695, %v1279_v33 }
0x1400   :  { %1804 = vpow2.f32 %v1499_v36 }
0x1401   :  { %1806 = vpow2.f32 %v1500_v37 }
0x140a   :  { %v1805_v38 = vpop.eup %1804 }
0x140b   :  { %v1807_v39 = vpop.eup %1806  ;;  %v1286_v32 = vadd.f32 1.0, %v1805_v38 }
0x140c   :  { %v1287_v9 = vadd.f32 1.0, %v1807_v39 }
0x140d   :  { %1808 = vrcp.f32 %v1286_v32 }
0x140e   :  { %1810 = vrcp.f32 %v1287_v9 }
0x1417   :  { %v1809_v43 = vpop.eup %1808 }
0x1418   :  { %v1811_v8 = vpop.eup %1810 }
0x1470   :  { %v1299_v45 = vpop.permute.xlu0 %1298  ;;  %v1297_v46 = vpop.permute.xlu1 %1296 }
0x1471   :  { %v1303_v49 = vmul.f32 %v1811_v8, %v1299_v45  ;;  %v1302_v50 = vmul.f32 %v1809_v43, %v1297_v46 }
0x1473   :  { %1308 = vrot.lane.b32.xlu0 %v1303_v49, %s1852_s2  ;;  %1306 = vrot.lane.b32.xlu1 %v1302_v50, %s1852_s2 }
0x14e5   :  { %v1309_v41 = vpop.permute.xlu0 %1308  ;;  %v1307_v44 = vpop.permute.xlu1 %1306 }
0x14e6   :  { %v1313_v51 = vadd.f32 %v1309_v41, %v1985_v40  ;;  %v1312_v4 = vadd.f32 %v1307_v44, %v1991_v42  ;;  %v1355_v40 = vld [vmem:[%s2257_s5] sm:$0xff]  ;;  %v1356_v42 = vld [vmem:[%s2257_s5 + $0x8] sm:$0xff] }
0x14e8   :  { %1812 = vtanh.f32 %v1313_v51 }
0x14e9   :  { %1814 = vtanh.f32 %v1312_v4 }
0x14f2   :  { %v1813_v52 = vpop.eup %1812 }
0x14f3   :  { %v1815_v53 = vpop.eup %1814  ;;  %1322 = vrot.lane.b32.xlu0 %v1813_v52, %s1854_s19 }
0x14f4   :  { %1320 = vrot.lane.b32.xlu1 %v1815_v53, %s1854_s19 }
0x14f7   :  { %433 = vrot.lane.b32.xlu0 %v2032_v59, %s1854_s19  ;;  %v1329_v59 = vrot.slane %v2161_v13, 7 }
0x14f8   :  { %285 = vrot.lane.b32.xlu1 %v2010_v17, %s1854_s19  ;;  %v1317_v17 = vsub.f32 1.0, %v1811_v8 }
0x14fb   :  { %734 = vrot.lane.b32.xlu0 %v2086_v35, %s1854_s19 }
0x14fc   :  { %583 = vrot.lane.b32.xlu1 %v2060_v48, %s1854_s19  ;;  %v1328_v48 = vrot.slane %v2163_v14, 7 }
0x14ff   :  { %1036 = vrot.lane.b32.xlu0 %v2138_v21, %s1854_s19 }
0x1500   :  { %885 = vrot.lane.b32.xlu1 %v2112_v27, %s1854_s19  ;;  %v1332_v27 = vmul.f32 %v1809_v43, %v1328_v48 }
0x1503   :  { %435 = vrot.lane.b32.xlu0 %v2034_v60, %s1854_s19 }
0x1504   :  { %1187 = vrot.lane.b32.xlu1 %v2163_v14, %s1854_s19 }
0x1507   :  { %736 = vrot.lane.b32.xlu0 %v2084_v34, %s1854_s19  ;;  %v1333_v34 = vmul.f32 %v1811_v8, %v1329_v59 }
0x1508   :  { %287 = vrot.lane.b32.xlu1 %v2007_v11, %s1854_s19  ;;  %v1706_v11 = vpack.c.bf16 %v1356_v42, %v1355_v40 }
0x150a   :  { %1707 = vmatprep.subr.bf16.mxu0 %v1706_v11 }
0x150b   :  { %1038 = vrot.lane.b32.xlu0 %v2136_v20, %s1854_s19  ;;  %1709 = vmatpush3.bf16.msra.mxu0 %v1706_v11 }
0x150c   :  { %585 = vrot.lane.b32.xlu1 %v2058_v47, %s1854_s19  ;;  %v1316_v47 = vsub.f32 1.0, %v1809_v43 }
0x1510   :  { %887 = vrot.lane.b32.xlu1 %v2110_v26, %s1854_s19 }
0x1514   :  { %1189 = vrot.lane.b32.xlu1 %v2161_v13, %s1854_s19 }
0x1565   :  { %v1323_v60 = vpop.permute.xlu0 %1322 }
0x1566   :  { %v1327_v35 = vmul.f32 %v1323_v60, %v1317_v17  ;;  %v1321_v26 = vpop.permute.xlu1 %1320 }
0x1567   :  { %v1326_v20 = vmul.f32 %v1321_v26, %v1316_v47 }
0x1568   :  { %v1335_v21 = vadd.f32 %v1333_v34, %v1327_v35 }
0x1569   :  { %v1334_v54 = vadd.f32 %v1332_v27, %v1326_v20  ;;  %v434_v55 = vpop.permute.xlu0 %433 }
0x156a   :  { %440 = vst.msk [vmem:[#allocation3] sm:$0x2] %vm439_vm4, %v434_v55  ;;  %v286_v56 = vpop.permute.xlu1 %285  ;;  %v1347_v57 = vrot.slane %v1335_v21, 7 }
0x156b   :  { %292 = vst.msk [vmem:[#allocation3] sm:$0x1] %vm291_vm5, %v286_v56  ;;  %1338 = vrot.lane.b32.xlu0 %v1334_v54, %s1854_s19 }
0x156c   :  { %1348 = vrot.lane.b32.xlu1 %v1347_v57, %s1854_s19 }
0x156d   :  { %v735_v58 = vpop.permute.xlu0 %734 }
0x156e   :  { %741 = vst.msk [vmem:[#allocation3] sm:$0x8] %vm740_vm6, %v735_v58  ;;  %v584_v61 = vpop.permute.xlu1 %583 }
0x156f   :  { %590 = vst.msk [vmem:[#allocation3] sm:$0x4] %vm589_vm7, %v584_v61  ;;  %1340 = vrot.lane.b32.xlu0 %v1335_v21, %s1854_s19 }
0x1571   :  { %v1037_v62 = vpop.permute.xlu0 %1036 }
0x1572   :  { %1043 = vst.msk [vmem:[#allocation3] sm:$0x20] %vm1042_vm8, %v1037_v62  ;;  %v886_v63 = vpop.permute.xlu1 %885 }
0x1573   :  { %892 = vst.msk [vmem:[#allocation3] sm:$0x10] %vm891_vm9, %v886_v63 }
0x1575   :  { %v436_v0 = vpop.permute.xlu0 %435 }
0x1576   :  { %441 = vst.msk [vmem:[#allocation3 + $0x8] sm:$0x2] %vm439_vm4, %v436_v0  ;;  %v1188_v1 = vpop.permute.xlu1 %1187 }
0x1577   :  { %1194 = vst.msk [vmem:[#allocation3] sm:$0x40] %vm1193_vm10, %v1188_v1 }
0x1579   :  { %v737_v2 = vpop.permute.xlu0 %736 }
0x157a   :  { %742 = vst.msk [vmem:[#allocation3 + $0x8] sm:$0x8] %vm740_vm6, %v737_v2  ;;  %v288_v3 = vpop.permute.xlu1 %287 }
0x157b   :  { %293 = vst.msk [vmem:[#allocation3 + $0x8] sm:$0x1] %vm291_vm5, %v288_v3 }
0x157d   :  { %v1039_v5 = vpop.permute.xlu0 %1038 }
0x157e   :  { %1044 = vst.msk [vmem:[#allocation3 + $0x8] sm:$0x20] %vm1042_vm8, %v1039_v5  ;;  %v586_v6 = vpop.permute.xlu1 %585 }
0x157f   :  { %591 = vst.msk [vmem:[#allocation3 + $0x8] sm:$0x4] %vm589_vm7, %v586_v6 }
0x1582   :  { %v888_v7 = vpop.permute.xlu1 %887 }
0x1583   :  { %893 = vst.msk [vmem:[#allocation3 + $0x8] sm:$0x10] %vm891_vm9, %v888_v7 }
0x1586   :  { %v1190_v10 = vpop.permute.xlu1 %1189 }
0x1587   :  { %1195 = vst.msk [vmem:[#allocation3 + $0x8] sm:$0x40] %vm1193_vm10, %v1190_v10 }
0x15dd   :  { %v1339_v12 = vpop.permute.xlu0 %1338 }
0x15de   :  { %1345 = vst.msk [vmem:[#allocation3] sm:$0x80] %vm1344_vm11, %v1339_v12  ;;  %1351 = vst.msk [vmem:[#allocation2 - $0x7] sm:$0x80] %vm1344_vm11, %v1339_v12  ;;  %v1349_v13 = vpop.permute.xlu1 %1348 }
0x15df   :  { %1352 = vst.msk [vmem:[#allocation2 + $0x1] sm:$0x1] %vm291_vm5, %v1349_v13 }
0x15e1   :  { %v1341_v14 = vpop.permute.xlu0 %1340 }
0x15e2   :  { %1346 = vst.msk [vmem:[#allocation3 + $0x8] sm:$0x80] %vm1344_vm11, %v1341_v14 }
0x15e5   :  { %v1353_v15 = vld [vmem:[#allocation3] sm:$0xff] }
0x15e6   :  { %1647 = vmatprep.mubr.msk.f32.mxu0 %vm145_vm2, %v1353_v15 }
0x15e9   :  { %v1354_v16 = vld [vmem:[#allocation3 + $0x8] sm:$0xff] }
0x15ea   :  { %1648 = vmatmul.mubr.msk.f32.vlgmr.msra.gmra.mrb[2].mxu0 %vm145_vm2, %v1354_v16 }
0x16bd   :  { %v1649_v19 = vpop.f32.mrb[2].mxu0 }
0x16be   :  { %v1442_v22 = vadd.f32 %v1649_v19, %v1501_v18  ;;  %v1436_v23 = vpop.f32.mrb[3].mxu0 }
0x16bf   :  { %v1437_v24 = vadd.f32 %v1501_v18, %v1436_v23 }
0x16c0   :  { %v1505_v25 = vmul.f32 -1.442695, %v1442_v22 }
0x16c1   :  { %v1504_v28 = vmul.f32 -1.442695, %v1437_v24 }
0x16c2   :  { %1816 = vpow2.f32 %v1505_v25 }
0x16c3   :  { %1818 = vpow2.f32 %v1504_v28 }
0x16cc   :  { %v1817_v29 = vpop.eup %1816 }
0x16cd   :  { %v1819_v30 = vpop.eup %1818  ;;  %v1452_v31 = vadd.f32 1.0, %v1817_v29 }
0x16ce   :  { %v1451_v33 = vadd.f32 1.0, %v1819_v30 }
0x16cf   :  { %1820 = vrcp.f32 %v1452_v31 }
0x16d0   :  { %1822 = vrcp.f32 %v1451_v33 }
0x16d9   :  { %v1821_v36 = vpop.eup %1820 }
0x16da   :  { %v1823_v37 = vpop.eup %1822  ;;  %1458 = vst [vmem:[#allocation4 + $0x8] sm:$0xff] %v1821_v36 }
0x16db   :  { %1457 = vst [vmem:[#allocation4] sm:$0xff] %v1823_v37 }
0x16dc   :  { %1835 = shalt.err (!%p1832_p4)
}
0x16dd   :  { %s1836_s29 = scalar_lea.hbm %s2259_s7, 256 }
0x16de   :  { %p1837_p5 = scmp.ne.s32.totalorder %s2259_s7, %s1836_s29  ;;  %p1840_p6 = scmp.lt.u32.totalorder %s1836_s29, %s2259_s7 }
0x16e0   :  { %p1842_p7 = pnand %p1840_p6, %p1837_p5 }
0x16e2   :  { %1845 = shalt.err (!%p1842_p7)
}
0x16e3   :  { %s1856_s11 = smov 128   ;;  %s1857_s12 = smov 8  }
0x16e4   :  { %1470 = dma.vmem_to_hbm [thread:$0]  %s1465_s26, 256, %s2259_s7, [#allocation5], %s1856_s11, %s1856_s11, %s1857_s12  }
0x16e5   :  { %1846 = dma.done.wait [#allocation5], 256  }
0x16e6   :  { %1847 = vsyncadd [#allocation5], 4294967040 }
0x16e7   :  { %1474 = vsyncpa [#allocation5], 1 }

</bundles_post_ra>
